<compile_context>
chip_gen: v7x
topology: tpu7x:2x2x1
jax: 0.10.0
libtpu: 0.0.40
codegen_flags: <defaults>
</compile_context>

<pallas_src>
import functools

import numpy as np
import jax
import jax.numpy as jnp
from jax import lax
from jax.experimental import pallas as pl
from jax.experimental.pallas import tpu as pltpu

LRELU_SLOPE = 0.1

# (KH, KW, stride_w, pad_h, pad_w, lrelu) for the 5 convs of SpecDiscriminator
_LAYER_CFG = [
    (3, 9, 1, 1, 4, True),
    (3, 9, 2, 1, 4, True),
    (3, 9, 2, 1, 4, True),
    (3, 3, 1, 1, 1, True),
    (3, 3, 1, 1, 1, False),   # self.out, no activation
]


# ----------------------------- Pallas kernel --------------------------------
def _spec_disc_kernel(x_ref, *refs, n_layers, lrelu_flags, h):
    """Fused 5-layer conv chain, whole batch folded into the row (M) axis.

    x_ref : (B*H, W)                    input (Cin=1), lane axis = W
    refs  : t_1..t_L (Win*Cin, 3*Wout*Cout)  bf16 banded weights (3 H-taps
                                             concatenated along N),
            b_1..b_L (1, Wout*Cout)          f32 tiled biases,
            o_1..o_L (B*H, Wout*Cout)        f32 lane-dense outputs.
    """
    t_refs = refs[:n_layers]
    b_refs = refs[n_layers:2 * n_layers]
    o_refs = refs[2 * n_layers:]

    bh = x_ref.shape[0]
    nb = bh // h

    # Edge-row masks (hoisted above the layer loop).  They zero the first /
    # last row of every batch slice so the sublane roll neither wraps around H
    # nor leaks across batch elements (this is exactly the pad_h=1 zero pad).
    row = lax.broadcasted_iota(jnp.int32, (bh, 1), 0)
    top = row == 0
    bot = row == (h - 1)
    for b in range(1, nb):
        top = jnp.logical_or(top, row == b * h)
        bot = jnp.logical_or(bot, row == b * h + h - 1)
    mask_top = jnp.logical_not(top).astype(jnp.float32)   # kills out[h] += z0[h-1] at h==0
    mask_bot = jnp.logical_not(bot).astype(jnp.float32)   # kills out[h] += z2[h+1] at h==H-1

    act = x_ref[...].astype(jnp.float32)                  # (B*H, Win*Cin)

    for l in range(n_layers):
        t_ref, b_ref, o_ref = t_refs[l], b_refs[l], o_refs[l]
        n = t_ref.shape[1] // 3
        # ONE MXU matmul per layer: the W-axis taps, W zero-padding, W stride
        # and all 3 kernel-H taps live inside the banded bf16 weight.
        z = jnp.dot(act.astype(jnp.bfloat16), t_ref[...],
                    preferred_element_type=jnp.float32)   # (B*H, 3*N) f32
        z0 = z[:, :n]            # kh = 0 tap: feeds out[h] from input row h-1
        z1 = z[:, n:2 * n]       # kh = 1 tap (center)
        z2 = z[:, 2 * n:]        # kh = 2 tap: feeds out[h] from input row h+1
        # H-shift on the XLU (roll) + VPU (mask) instead of MXU shift matmuls.
        acc = (z1
               + pltpu.roll(z0, 1, 0) * mask_top          # roll[i] = z0[i-1]
               + pltpu.roll(z2, bh - 1, 0) * mask_bot)    # roll[i] = z2[i+1]
        acc = acc + b_ref[...]
        if lrelu_flags[l]:
            acc = jnp.where(acc >= 0, acc, LRELU_SLOPE * acc)
        o_ref[...] = acc
        act = acc


# ------------------- host-side (numpy) weight packing ------------------------
def _banded_tap_weights(w_oihw, win, pw, sw):
    """T[kh, wi*Cin+ci, wo*Cout+co] = W[co,ci,kh, wi-(wo*sw-pw)] (0 outside band).

    Folds the W-axis taps, W zero-padding and W stride of one Conv2d into a
    dense (KH, Win*Cin, Wout*Cout) matrix so each conv becomes a single
    lane-dense matmul inside the kernel (per H-tap, concatenated later).
    """
    w = np.asarray(w_oihw, np.float32)
    cout, cin, KH, KW = w.shape
    wout = (win + 2 * pw - KW) // sw + 1
    t = np.zeros((KH, win * cin, wout * cout), np.float32)
    for kh in range(KH):
        for wo in range(wout):
            for kw in range(KW):
                wi = wo * sw - pw + kw
                if 0 <= wi < win:
                    t[kh, wi * cin:(wi + 1) * cin,
                      wo * cout:(wo + 1) * cout] = w[:, :, kh, kw].T
    return t, wout


def pack_spec_discriminator_params(params, w_in):
    """One-time host-side packing (NOT inside the jitted forward).

    Returns (tuple of bf16 (K, 3*N) banded weights, tuple of f32 (1, N) tiled
    biases, tuple of Cout per layer).
    """
    t_list, b_list, couts = [], [], []
    w_cur = w_in
    for p, (kh, kw, sw, ph, pw, _) in zip(params, _LAYER_CFG):
        assert kh == 3 and ph == 1          # roll+mask H handling assumes this
        cout = p["w_oihw"].shape[0]
        taps, w_out = _banded_tap_weights(p["w_oihw"], w_cur, pw, sw)
        t_cat = np.concatenate([taps[0], taps[1], taps[2]], axis=1)   # (K, 3*N)
        t_list.append(jnp.asarray(t_cat, jnp.bfloat16))
        b_tiled = np.tile(np.asarray(p["b"], np.float32), w_out)
        b_list.append(jnp.asarray(b_tiled.reshape(1, w_out * cout), jnp.float32))
        couts.append(cout)
        w_cur = w_out
    return tuple(t_list), tuple(b_list), tuple(couts)


# ------------------------------- forward ------------------------------------
@functools.partial(jax.jit, static_argnames=("couts",))
def spec_discriminator_forward(y_nchw, t_cat, biases, couts):
    """Matches SpecDiscriminator.forward: returns (flatten(y, 1, -1), fmap[NCHW])."""
    B, c_in, H, W = y_nchw.shape
    assert c_in == 1
    x = y_nchw.reshape(B * H, W)            # Cin=1 -> lane-dense (B*H, W) slab

    n_layers = len(t_cat)
    n_list = [t.shape[1] // 3 for t in t_cat]

    kernel = functools.partial(
        _spec_disc_kernel, n_layers=n_layers,
        lrelu_flags=tuple(cfg[5] for cfg in _LAYER_CFG), h=H)

    # Grid-less (single-step) call: every input/output is mapped whole into
    # VMEM (~1.2 MiB total), no double-buffering of never-changing weights.
    outs = pl.pallas_call(
        kernel,
        out_shape=[jax.ShapeDtypeStruct((B * H, n), jnp.float32) for n in n_list],
        compiler_params=pltpu.CompilerParams(
            vmem_limit_bytes=32 * 1024 * 1024),   # fits v7x's 64 MiB with headroom
    )(x, *t_cat, *biases)

    # flat directly from the last lane-dense slab (Cout=1 -> same element order
    # as torch.flatten(y, 1, -1)); fmaps get the PyTorch NCHW layout.
    flat = outs[-1].reshape(B, -1)
    fmap = []
    for o, n, co in zip(outs, n_list, couts):
        wo = n // co
        fmap.append(jnp.transpose(o.reshape(B, H, wo, co), (0, 3, 1, 2)))
    return flat, fmap


# ------------------------------ parameters ----------------------------------
def init_conv_params(key, cin, cout, kh, kw):
    """Deterministic init reproducing weight_norm reparameterization at init."""
    k1, k2 = jax.random.split(key)
    v = jax.random.normal(k1, (cout, cin, kh, kw), jnp.float32) * 0.1     # OIHW
    norm = jnp.sqrt(jnp.sum(v * v, axis=(1, 2, 3), keepdims=True))
    g = norm                                   # weight_norm init: g = ||v||
    w_oihw = g * v / norm                      # effective weight (== v at init)
    b = jax.random.normal(k2, (cout,), jnp.float32) * 0.01
    return {"w_oihw": w_oihw, "b": b}


def make_spec_discriminator_params(key):
    keys = jax.random.split(key, 5)
    return [
        init_conv_params(keys[0], 1, 32, 3, 9),
        init_conv_params(keys[1], 32, 32, 3, 9),
        init_conv_params(keys[2], 32, 32, 3, 9),
        init_conv_params(keys[3], 32, 32, 3, 3),
        init_conv_params(keys[4], 32, 1, 3, 3),
    ]


# --------------------------- pure-JAX reference ------------------------------
def spec_discriminator_ref(y, params, quantize_bf16=False):
    """Reference conv chain.  quantize_bf16=True rounds weights/activations
    through bf16 exactly like the kernel (f32 accumulation), so it isolates
    kernel-logic correctness from bf16 quantization error."""
    fmap = []
    for p, (kh, kw, sw, ph, pw, lrelu) in zip(params, _LAYER_CFG):
        w = p["w_oihw"]
        x_in = y
        if quantize_bf16:
            w = w.astype(jnp.bfloat16).astype(jnp.float32)
            x_in = x_in.astype(jnp.bfloat16).astype(jnp.float32)
        y = lax.conv_general_dilated(
            x_in, w, window_strides=(1, sw),
            padding=[(ph, ph), (pw, pw)],
            dimension_numbers=("NCHW", "OIHW", "NCHW"),
            precision=lax.Precision.HIGHEST)
        y = y + p["b"].reshape(1, -1, 1, 1)
        if lrelu:
            y = jnp.where(y >= 0, y, LRELU_SLOPE * y)
        fmap.append(y)
    return y.reshape(y.shape[0], -1), fmap


# --------------------------------- main --------------------------------------
if __name__ == "__main__":
    key = jax.random.PRNGKey(0)
    k_in, k_par = jax.random.split(key)

    # small spectrogram-like input: (batch=2, channels=1, freq=16, time=16) NCHW
    x = jax.random.normal(k_in, (2, 1, 16, 16), jnp.float32)
    params = make_spec_discriminator_params(k_par)

    # one-time host-side packing (banded bf16 weights + tiled f32 biases)
    t_cat, biases, couts = pack_spec_discriminator_params(params, w_in=x.shape[-1])

    flat, fmap = spec_discriminator_forward(x, t_cat, biases, couts=couts)
    flat = jax.block_until_ready(flat)
    fmap = [jax.block_until_ready(f) for f in fmap]

    # Check against a reference that applies the same bf16 weight/activation
    # rounding as the kernel (f32 accumulation in both); remaining differences
    # are accumulation-order / occasional bf16 rounding-boundary effects.
    flat_ref, fmap_ref = spec_discriminator_ref(x, params, quantize_bf16=True)
    assert flat.shape == (2, 64), flat.shape
    assert jnp.allclose(flat, flat_ref, atol=2e-2, rtol=2e-2)
    for a, b in zip(fmap, fmap_ref):
        assert a.shape == b.shape, (a.shape, b.shape)
        assert jnp.allclose(a, b, atol=2e-2, rtol=2e-2)

    print("KERNEL_OK")
</pallas_src>

<mosaic_0001>
module attributes {stable_mosaic.version = 11 : i64} {
  func.func @_spec_disc_kernel(%arg0: memref<32x16xf32, #tpu.memory_space<vmem>>, %arg1: memref<16x1536xbf16, #tpu.memory_space<vmem>>, %arg2: memref<512x768xbf16, #tpu.memory_space<vmem>>, %arg3: memref<256x384xbf16, #tpu.memory_space<vmem>>, %arg4: memref<128x384xbf16, #tpu.memory_space<vmem>>, %arg5: memref<128x12xbf16, #tpu.memory_space<vmem>>, %arg6: memref<1x512xf32, #tpu.memory_space<vmem>>, %arg7: memref<1x256xf32, #tpu.memory_space<vmem>>, %arg8: memref<1x128xf32, #tpu.memory_space<vmem>>, %arg9: memref<1x128xf32, #tpu.memory_space<vmem>>, %arg10: memref<1x4xf32, #tpu.memory_space<vmem>>, %arg11: memref<32x512xf32, #tpu.memory_space<vmem>>, %arg12: memref<32x256xf32, #tpu.memory_space<vmem>>, %arg13: memref<32x128xf32, #tpu.memory_space<vmem>>, %arg14: memref<32x128xf32, #tpu.memory_space<vmem>>, %arg15: memref<32x4xf32, #tpu.memory_space<vmem>>) attributes {dimension_semantics = [], scalar_prefetch = 0 : i64, scratch_operands = 0 : i64, tpu.core_type = #tpu.core_type<tc>} {
    %0 = tpu.iota {dimensions = array<i32: 0>} : vector<32x1xi32>
    %c0_i32 = arith.constant 0 : i32
    %1 = vector.broadcast %c0_i32 : i32 to vector<32x1xi32>
    %2 = arith.cmpi eq, %0, %1 : vector<32x1xi32>
    %c15_i32 = arith.constant 15 : i32
    %3 = vector.broadcast %c15_i32 : i32 to vector<32x1xi32>
    %4 = arith.cmpi eq, %0, %3 : vector<32x1xi32>
    %c16_i32 = arith.constant 16 : i32
    %5 = vector.broadcast %c16_i32 : i32 to vector<32x1xi32>
    %6 = arith.cmpi eq, %0, %5 : vector<32x1xi32>
    %7 = arith.ori %2, %6 : vector<32x1xi1>
    %c31_i32 = arith.constant 31 : i32
    %8 = vector.broadcast %c31_i32 : i32 to vector<32x1xi32>
    %9 = arith.cmpi eq, %0, %8 : vector<32x1xi32>
    %10 = arith.ori %4, %9 : vector<32x1xi1>
    %cst = arith.constant dense<true> : vector<32x1xi1>
    %11 = arith.xori %7, %cst : vector<32x1xi1>
    %12 = arith.extui %11 : vector<32x1xi1> to vector<32x1xi32>
    %13 = arith.sitofp %12 : vector<32x1xi32> to vector<32x1xf32>
    %cst_0 = arith.constant dense<true> : vector<32x1xi1>
    %14 = arith.xori %10, %cst_0 : vector<32x1xi1>
    %15 = arith.extui %14 : vector<32x1xi1> to vector<32x1xi32>
    %16 = arith.sitofp %15 : vector<32x1xi32> to vector<32x1xf32>
    %c0 = arith.constant 0 : index
    %c0_1 = arith.constant 0 : index
    %17 = vector.load %arg0[%c0, %c0_1] : memref<32x16xf32, #tpu.memory_space<vmem>>, vector<32x16xf32>
    %18 = arith.truncf %17 : vector<32x16xf32> to vector<32x16xbf16>
    %c0_2 = arith.constant 0 : index
    %c0_3 = arith.constant 0 : index
    %19 = vector.load %arg1[%c0_2, %c0_3] : memref<16x1536xbf16, #tpu.memory_space<vmem>>, vector<16x1536xbf16>
    %cst_4 = arith.constant dense<0.000000e+00> : vector<32x1536xf32>
    %20 = tpu.matmul %18, %19, %cst_4 {dimension_numbers = #tpu.dot_dimension_numbers<[1], [0], [0], [1], [0, 0, 1, 1], [], []>} : vector<32x16xbf16>, vector<16x1536xbf16>, vector<32x1536xf32> -> vector<32x1536xf32>
    %21 = vector.extract_strided_slice %20 {offsets = [0, 0], sizes = [32, 512], strides = [1, 1]} : vector<32x1536xf32> to vector<32x512xf32>
    %22 = vector.extract_strided_slice %20 {offsets = [0, 512], sizes = [32, 512], strides = [1, 1]} : vector<32x1536xf32> to vector<32x512xf32>
    %23 = vector.extract_strided_slice %20 {offsets = [0, 1024], sizes = [32, 512], strides = [1, 1]} : vector<32x1536xf32> to vector<32x512xf32>
    %c1_i32 = arith.constant 1 : i32
    %24 = tpu.dynamic_rotate %21 by %c1_i32 dim 0 : vector<32x512xf32>, i32 -> vector<32x512xf32>
    %25 = vector.broadcast %13 : vector<32x1xf32> to vector<32x512xf32>
    %26 = arith.mulf %24, %25 : vector<32x512xf32>
    %27 = arith.addf %22, %26 : vector<32x512xf32>
    %c31_i32_5 = arith.constant 31 : i32
    %28 = tpu.dynamic_rotate %23 by %c31_i32_5 dim 0 : vector<32x512xf32>, i32 -> vector<32x512xf32>
    %29 = vector.broadcast %16 : vector<32x1xf32> to vector<32x512xf32>
    %30 = arith.mulf %28, %29 : vector<32x512xf32>
    %31 = arith.addf %27, %30 : vector<32x512xf32>
    %c0_6 = arith.constant 0 : index
    %c0_7 = arith.constant 0 : index
    %32 = vector.load %arg6[%c0_6, %c0_7] : memref<1x512xf32, #tpu.memory_space<vmem>>, vector<1x512xf32>
    %33 = vector.broadcast %32 : vector<1x512xf32> to vector<32x512xf32>
    %34 = arith.addf %31, %33 : vector<32x512xf32>
    %cst_8 = arith.constant 0.000000e+00 : f32
    %35 = vector.broadcast %cst_8 : f32 to vector<32x512xf32>
    %36 = arith.cmpf oge, %34, %35 : vector<32x512xf32>
    %cst_9 = arith.constant 1.000000e-01 : f32
    %37 = vector.broadcast %cst_9 : f32 to vector<32x512xf32>
    %38 = arith.mulf %37, %34 : vector<32x512xf32>
    %39 = arith.select %36, %34, %38 : vector<32x512xi1>, vector<32x512xf32>
    %c0_10 = arith.constant 0 : index
    %c0_11 = arith.constant 0 : index
    %40 = vector.load %arg11[%c0_10, %c0_11] : memref<32x512xf32, #tpu.memory_space<vmem>>, vector<32x512xf32>
    tpu.vector_store %arg11[%c0_10, %c0_11], %39 {strides = array<i32>} : memref<32x512xf32, #tpu.memory_space<vmem>>, vector<32x512xf32>,
    %41 = arith.truncf %39 : vector<32x512xf32> to vector<32x512xbf16>
    %c0_12 = arith.constant 0 : index
    %c0_13 = arith.constant 0 : index
    %42 = vector.load %arg2[%c0_12, %c0_13] : memref<512x768xbf16, #tpu.memory_space<vmem>>, vector<512x768xbf16>
    %cst_14 = arith.constant dense<0.000000e+00> : vector<32x768xf32>
    %43 = tpu.matmul %41, %42, %cst_14 {dimension_numbers = #tpu.dot_dimension_numbers<[1], [0], [0], [1], [0, 0, 1, 1], [], []>} : vector<32x512xbf16>, vector<512x768xbf16>, vector<32x768xf32> -> vector<32x768xf32>
    %44 = vector.extract_strided_slice %43 {offsets = [0, 0], sizes = [32, 256], strides = [1, 1]} : vector<32x768xf32> to vector<32x256xf32>
    %45 = vector.extract_strided_slice %43 {offsets = [0, 256], sizes = [32, 256], strides = [1, 1]} : vector<32x768xf32> to vector<32x256xf32>
    %46 = vector.extract_strided_slice %43 {offsets = [0, 512], sizes = [32, 256], strides = [1, 1]} : vector<32x768xf32> to vector<32x256xf32>
    %c1_i32_15 = arith.constant 1 : i32
    %47 = tpu.dynamic_rotate %44 by %c1_i32_15 dim 0 : vector<32x256xf32>, i32 -> vector<32x256xf32>
    %48 = vector.broadcast %13 : vector<32x1xf32> to vector<32x256xf32>
    %49 = arith.mulf %47, %48 : vector<32x256xf32>
    %50 = arith.addf %45, %49 : vector<32x256xf32>
    %c31_i32_16 = arith.constant 31 : i32
    %51 = tpu.dynamic_rotate %46 by %c31_i32_16 dim 0 : vector<32x256xf32>, i32 -> vector<32x256xf32>
    %52 = vector.broadcast %16 : vector<32x1xf32> to vector<32x256xf32>
    %53 = arith.mulf %51, %52 : vector<32x256xf32>
    %54 = arith.addf %50, %53 : vector<32x256xf32>
    %c0_17 = arith.constant 0 : index
    %c0_18 = arith.constant 0 : index
    %55 = vector.load %arg7[%c0_17, %c0_18] : memref<1x256xf32, #tpu.memory_space<vmem>>, vector<1x256xf32>
    %56 = vector.broadcast %55 : vector<1x256xf32> to vector<32x256xf32>
    %57 = arith.addf %54, %56 : vector<32x256xf32>
    %cst_19 = arith.constant 0.000000e+00 : f32
    %58 = vector.broadcast %cst_19 : f32 to vector<32x256xf32>
    %59 = arith.cmpf oge, %57, %58 : vector<32x256xf32>
    %cst_20 = arith.constant 1.000000e-01 : f32
    %60 = vector.broadcast %cst_20 : f32 to vector<32x256xf32>
    %61 = arith.mulf %60, %57 : vector<32x256xf32>
    %62 = arith.select %59, %57, %61 : vector<32x256xi1>, vector<32x256xf32>
    %c0_21 = arith.constant 0 : index
    %c0_22 = arith.constant 0 : index
    %63 = vector.load %arg12[%c0_21, %c0_22] : memref<32x256xf32, #tpu.memory_space<vmem>>, vector<32x256xf32>
    tpu.vector_store %arg12[%c0_21, %c0_22], %62 {strides = array<i32>} : memref<32x256xf32, #tpu.memory_space<vmem>>, vector<32x256xf32>,
    %64 = arith.truncf %62 : vector<32x256xf32> to vector<32x256xbf16>
    %c0_23 = arith.constant 0 : index
    %c0_24 = arith.constant 0 : index
    %65 = vector.load %arg3[%c0_23, %c0_24] : memref<256x384xbf16, #tpu.memory_space<vmem>>, vector<256x384xbf16>
    %cst_25 = arith.constant dense<0.000000e+00> : vector<32x384xf32>
    %66 = tpu.matmul %64, %65, %cst_25 {dimension_numbers = #tpu.dot_dimension_numbers<[1], [0], [0], [1], [0, 0, 1, 1], [], []>} : vector<32x256xbf16>, vector<256x384xbf16>, vector<32x384xf32> -> vector<32x384xf32>
    %67 = vector.extract_strided_slice %66 {offsets = [0, 0], sizes = [32, 128], strides = [1, 1]} : vector<32x384xf32> to vector<32x128xf32>
    %68 = vector.extract_strided_slice %66 {offsets = [0, 128], sizes = [32, 128], strides = [1, 1]} : vector<32x384xf32> to vector<32x128xf32>
    %69 = vector.extract_strided_slice %66 {offsets = [0, 256], sizes = [32, 128], strides = [1, 1]} : vector<32x384xf32> to vector<32x128xf32>
    %c1_i32_26 = arith.constant 1 : i32
    %70 = tpu.dynamic_rotate %67 by %c1_i32_26 dim 0 : vector<32x128xf32>, i32 -> vector<32x128xf32>
    %71 = vector.broadcast %13 : vector<32x1xf32> to vector<32x128xf32>
    %72 = arith.mulf %70, %71 : vector<32x128xf32>
    %73 = arith.addf %68, %72 : vector<32x128xf32>
    %c31_i32_27 = arith.constant 31 : i32
    %74 = tpu.dynamic_rotate %69 by %c31_i32_27 dim 0 : vector<32x128xf32>, i32 -> vector<32x128xf32>
    %75 = vector.broadcast %16 : vector<32x1xf32> to vector<32x128xf32>
    %76 = arith.mulf %74, %75 : vector<32x128xf32>
    %77 = arith.addf %73, %76 : vector<32x128xf32>
    %c0_28 = arith.constant 0 : index
    %c0_29 = arith.constant 0 : index
    %78 = vector.load %arg8[%c0_28, %c0_29] : memref<1x128xf32, #tpu.memory_space<vmem>>, vector<1x128xf32>
    %79 = vector.broadcast %78 : vector<1x128xf32> to vector<32x128xf32>
    %80 = arith.addf %77, %79 : vector<32x128xf32>
    %cst_30 = arith.constant 0.000000e+00 : f32
    %81 = vector.broadcast %cst_30 : f32 to vector<32x128xf32>
    %82 = arith.cmpf oge, %80, %81 : vector<32x128xf32>
    %cst_31 = arith.constant 1.000000e-01 : f32
    %83 = vector.broadcast %cst_31 : f32 to vector<32x128xf32>
    %84 = arith.mulf %83, %80 : vector<32x128xf32>
    %85 = arith.select %82, %80, %84 : vector<32x128xi1>, vector<32x128xf32>
    %c0_32 = arith.constant 0 : index
    %c0_33 = arith.constant 0 : index
    %86 = vector.load %arg13[%c0_32, %c0_33] : memref<32x128xf32, #tpu.memory_space<vmem>>, vector<32x128xf32>
    tpu.vector_store %arg13[%c0_32, %c0_33], %85 {strides = array<i32>} : memref<32x128xf32, #tpu.memory_space<vmem>>, vector<32x128xf32>,
    %87 = arith.truncf %85 : vector<32x128xf32> to vector<32x128xbf16>
    %c0_34 = arith.constant 0 : index
    %c0_35 = arith.constant 0 : index
    %88 = vector.load %arg4[%c0_34, %c0_35] : memref<128x384xbf16, #tpu.memory_space<vmem>>, vector<128x384xbf16>
    %cst_36 = arith.constant dense<0.000000e+00> : vector<32x384xf32>
    %89 = tpu.matmul %87, %88, %cst_36 {dimension_numbers = #tpu.dot_dimension_numbers<[1], [0], [0], [1], [0, 0, 1, 1], [], []>} : vector<32x128xbf16>, vector<128x384xbf16>, vector<32x384xf32> -> vector<32x384xf32>
    %90 = vector.extract_strided_slice %89 {offsets = [0, 0], sizes = [32, 128], strides = [1, 1]} : vector<32x384xf32> to vector<32x128xf32>
    %91 = vector.extract_strided_slice %89 {offsets = [0, 128], sizes = [32, 128], strides = [1, 1]} : vector<32x384xf32> to vector<32x128xf32>
    %92 = vector.extract_strided_slice %89 {offsets = [0, 256], sizes = [32, 128], strides = [1, 1]} : vector<32x384xf32> to vector<32x128xf32>
    %c1_i32_37 = arith.constant 1 : i32
    %93 = tpu.dynamic_rotate %90 by %c1_i32_37 dim 0 : vector<32x128xf32>, i32 -> vector<32x128xf32>
    %94 = vector.broadcast %13 : vector<32x1xf32> to vector<32x128xf32>
    %95 = arith.mulf %93, %94 : vector<32x128xf32>
    %96 = arith.addf %91, %95 : vector<32x128xf32>
    %c31_i32_38 = arith.constant 31 : i32
    %97 = tpu.dynamic_rotate %92 by %c31_i32_38 dim 0 : vector<32x128xf32>, i32 -> vector<32x128xf32>
    %98 = vector.broadcast %16 : vector<32x1xf32> to vector<32x128xf32>
    %99 = arith.mulf %97, %98 : vector<32x128xf32>
    %100 = arith.addf %96, %99 : vector<32x128xf32>
    %c0_39 = arith.constant 0 : index
    %c0_40 = arith.constant 0 : index
    %101 = vector.load %arg9[%c0_39, %c0_40] : memref<1x128xf32, #tpu.memory_space<vmem>>, vector<1x128xf32>
    %102 = vector.broadcast %101 : vector<1x128xf32> to vector<32x128xf32>
    %103 = arith.addf %100, %102 : vector<32x128xf32>
    %cst_41 = arith.constant 0.000000e+00 : f32
    %104 = vector.broadcast %cst_41 : f32 to vector<32x128xf32>
    %105 = arith.cmpf oge, %103, %104 : vector<32x128xf32>
    %cst_42 = arith.constant 1.000000e-01 : f32
    %106 = vector.broadcast %cst_42 : f32 to vector<32x128xf32>
    %107 = arith.mulf %106, %103 : vector<32x128xf32>
    %108 = arith.select %105, %103, %107 : vector<32x128xi1>, vector<32x128xf32>
    %c0_43 = arith.constant 0 : index
    %c0_44 = arith.constant 0 : index
    %109 = vector.load %arg14[%c0_43, %c0_44] : memref<32x128xf32, #tpu.memory_space<vmem>>, vector<32x128xf32>
    tpu.vector_store %arg14[%c0_43, %c0_44], %108 {strides = array<i32>} : memref<32x128xf32, #tpu.memory_space<vmem>>, vector<32x128xf32>,
    %110 = arith.truncf %108 : vector<32x128xf32> to vector<32x128xbf16>
    %c0_45 = arith.constant 0 : index
    %c0_46 = arith.constant 0 : index
    %111 = vector.load %arg5[%c0_45, %c0_46] : memref<128x12xbf16, #tpu.memory_space<vmem>>, vector<128x12xbf16>
    %cst_47 = arith.constant dense<0.000000e+00> : vector<32x12xf32>
    %112 = tpu.matmul %110, %111, %cst_47 {dimension_numbers = #tpu.dot_dimension_numbers<[1], [0], [0], [1], [0, 0, 1, 1], [], []>} : vector<32x128xbf16>, vector<128x12xbf16>, vector<32x12xf32> -> vector<32x12xf32>
    %113 = vector.extract_strided_slice %112 {offsets = [0, 0], sizes = [32, 4], strides = [1, 1]} : vector<32x12xf32> to vector<32x4xf32>
    %114 = vector.extract_strided_slice %112 {offsets = [0, 4], sizes = [32, 4], strides = [1, 1]} : vector<32x12xf32> to vector<32x4xf32>
    %115 = vector.extract_strided_slice %112 {offsets = [0, 8], sizes = [32, 4], strides = [1, 1]} : vector<32x12xf32> to vector<32x4xf32>
    %c1_i32_48 = arith.constant 1 : i32
    %116 = tpu.dynamic_rotate %113 by %c1_i32_48 dim 0 : vector<32x4xf32>, i32 -> vector<32x4xf32>
    %117 = vector.broadcast %13 : vector<32x1xf32> to vector<32x4xf32>
    %118 = arith.mulf %116, %117 : vector<32x4xf32>
    %119 = arith.addf %114, %118 : vector<32x4xf32>
    %c31_i32_49 = arith.constant 31 : i32
    %120 = tpu.dynamic_rotate %115 by %c31_i32_49 dim 0 : vector<32x4xf32>, i32 -> vector<32x4xf32>
    %121 = vector.broadcast %16 : vector<32x1xf32> to vector<32x4xf32>
    %122 = arith.mulf %120, %121 : vector<32x4xf32>
    %123 = arith.addf %119, %122 : vector<32x4xf32>
    %c0_50 = arith.constant 0 : index
    %c0_51 = arith.constant 0 : index
    %124 = vector.load %arg10[%c0_50, %c0_51] : memref<1x4xf32, #tpu.memory_space<vmem>>, vector<1x4xf32>
    %125 = vector.broadcast %124 : vector<1x4xf32> to vector<32x4xf32>
    %126 = arith.addf %123, %125 : vector<32x4xf32>
    %c0_52 = arith.constant 0 : index
    %c0_53 = arith.constant 0 : index
    %127 = vector.load %arg15[%c0_52, %c0_53] : memref<32x4xf32, #tpu.memory_space<vmem>>, vector<32x4xf32>
    tpu.vector_store %arg15[%c0_52, %c0_53], %126 {strides = array<i32>} : memref<32x4xf32, #tpu.memory_space<vmem>>, vector<32x4xf32>,
    return
  }
}

</mosaic_0001>

<bundles_post_ra>
// kernel: spec_discriminator_forward.1
= control target key start
LH: loop header
LB: loop body
LE: loop exit
PB: predicated region body
PF: predicated region fallthrough
CT: control target
= control target key end

     0   :  { %21 = vsyncpa [#allocation3], 0  ;;  %s5122_s0 = inlined_call_operand.vmem [shape: f32[32,16], index: 0, kind: input, shape index: {}]   ;;  %s5123_s1 = inlined_call_operand.hbm [shape: bf16[16,1536], index: 1, kind: input, shape index: {}]   ;;  %s5124_s2 = inlined_call_operand.hbm [shape: bf16[512,768], index: 2, kind: input, shape index: {}]   ;;  %s5125_s3 = inlined_call_operand.hbm [shape: bf16[256,384], index: 3, kind: input, shape index: {}]   ;;  %s5126_s4 = inlined_call_operand.hbm [shape: bf16[128,384], index: 4, kind: input, shape index: {}]   ;;  %s5127_s5 = inlined_call_operand.vmem [shape: bf16[128,12], index: 5, kind: input, shape index: {}]   ;;  %s5128_s6 = inlined_call_operand.vmem [shape: f32[1,512], index: 6, kind: input, shape index: {}]   ;;  %s5129_s7 = inlined_call_operand.vmem [shape: f32[1,256], index: 7, kind: input, shape index: {}]   ;;  %s5130_s8 = inlined_call_operand.vmem [shape: f32[1,128], index: 8, kind: input, shape index: {}]   ;;  %s5131_s9 = inlined_call_operand.vmem [shape: f32[1,128], index: 9, kind: input, shape index: {}]   ;;  %s5132_s10 = inlined_call_operand.vmem [shape: f32[1,4], index: 10, kind: input, shape index: {}]   ;;  %s5133_s11 = inlined_call_operand.vmem [shape: f32[32,512], index: 11, kind: output, shape index: {0}]   ;;  %s5134_s12 = inlined_call_operand.vmem [shape: f32[32,256], index: 12, kind: output, shape index: {1}]   ;;  %s5135_s13 = inlined_call_operand.vmem [shape: f32[32,128], index: 13, kind: output, shape index: {2}]   ;;  %s5136_s14 = inlined_call_operand.vmem [shape: f32[32,128], index: 14, kind: output, shape index: {3}]   ;;  %s5137_s15 = inlined_call_operand.vmem [shape: f32[32,4], index: 15, kind: output, shape index: {4}]  }
   0x1   :  { %22 = vsyncpa [#allocation5], 0 }
   0x2   :  { %23 = vsyncpa [#allocation8], 0  ;;  %s4376_s18 = smov [#allocation4]   ;;  %s4282_s22 = scalar_lea.hbm %s5124_s2, 24576 }
   0x3   :  { %s43_s19 = sshll.u32 %s4376_s18, 4  ;;  %p4283_p0 = scmp.ne.s32.totalorder %s5124_s2, %s4282_s22  ;;  %s44_s19 = int_to_ptr.vmem [resolvable:$true] %s43_s19 }
   0x4   :  { %p4286_p1 = scmp.lt.u32.totalorder %s4282_s22, %s5124_s2 }
   0x6   :  { %p4288_p2 = pnand %p4286_p1, %p4283_p0 }
   0x8   :  { %4291 = shalt.err (!%p4288_p2)
}
   0x9   :  { %s4292_s27 = scalar_lea.vmem %s44_s19, 24576  ;;  %p4297_p4 = scmp.lt.s32.totalorder %s44_s19, %s44_s19 }
   0xa   :  { %p4293_p3 = scmp.ne.s32.totalorder %s44_s19, %s4292_s27  ;;  %p4298_p5 = scmp.lt.s32.totalorder %s4292_s27, %s4292_s27 }
   0xc   :  { %p4299_p6 = por %p4298_p5, %p4297_p4 }
   0xe   :  { %p4300_p7 = pnand %p4299_p6, %p4293_p3 }
  0x10   :  { %4303 = shalt.err (!%p4300_p7)
}
  0x11   :  { %s4377_s28 = smov 384   ;;  %s4378_s29 = smov 24  }
  0x12   :  { %49 = dma.hbm_to_vmem [thread:$0]  %s5124_s2, 24576, %s44_s19, [#allocation5], %s4377_s28, %s4377_s28, %s4378_s29  }
  0x13   :  { %s4379_s17 = smov [#allocation2]   ;;  %s4304_s22 = scalar_lea.hbm %s5123_s1, 1536 }
  0x14   :  { %s31_s18 = sshll.u32 %s4379_s17, 4  ;;  %p4305_p8 = scmp.ne.s32.totalorder %s5123_s1, %s4304_s22  ;;  %s32_s18 = int_to_ptr.vmem [resolvable:$true] %s31_s18 }
  0x15   :  { %p4308_p9 = scmp.lt.u32.totalorder %s4304_s22, %s5123_s1 }
  0x17   :  { %p4310_p10 = pnand %p4308_p9, %p4305_p8 }
  0x19   :  { %4313 = shalt.err (!%p4310_p10)
}
  0x1a   :  { %s4314_s27 = scalar_lea.vmem %s32_s18, 1536  ;;  %p4319_p12 = scmp.lt.s32.totalorder %s32_s18, %s32_s18 }
  0x1b   :  { %p4315_p11 = scmp.ne.s32.totalorder %s32_s18, %s4314_s27  ;;  %p4320_p13 = scmp.lt.s32.totalorder %s4314_s27, %s4314_s27 }
  0x1d   :  { %p4321_p0 = por %p4320_p13, %p4319_p12 }
  0x1f   :  { %p4322_p1 = pnand %p4321_p0, %p4315_p11 }
  0x21   :  { %4325 = shalt.err (!%p4322_p1)
}
  0x22   :  { %s4380_s2 = smov 768   ;;  %s4381_s19 = smov 48  }
  0x23   :  { %37 = dma.hbm_to_vmem [thread:$0]  %s5123_s1, 1536, %s32_s18, [#allocation3], %s4380_s2, %s4380_s2, %s4381_s19  }
  0x24   :  { %s4382_s30 = smov [#allocation6]   ;;  %s4326_s21 = scalar_lea.hbm %s5125_s3, 6144 }
  0x25   :  { %s55_s16 = sshll.u32 %s4382_s30, 4  ;;  %p4327_p2 = scmp.ne.s32.totalorder %s5125_s3, %s4326_s21  ;;  %s56_s16 = int_to_ptr.vmem [resolvable:$true] %s55_s16 }
  0x26   :  { %p4330_p3 = scmp.lt.u32.totalorder %s4326_s21, %s5125_s3 }
  0x28   :  { %p4332_p4 = pnand %p4330_p3, %p4327_p2 }
  0x2a   :  { %4335 = shalt.err (!%p4332_p4)
}
  0x2b   :  { %s4336_s26 = scalar_lea.vmem %s56_s16, 6144  ;;  %p4341_p6 = scmp.lt.s32.totalorder %s56_s16, %s56_s16 }
  0x2c   :  { %p4337_p5 = scmp.ne.s32.totalorder %s56_s16, %s4336_s26  ;;  %p4342_p7 = scmp.lt.s32.totalorder %s4336_s26, %s4336_s26 }
  0x2e   :  { %p4343_p8 = por %p4342_p7, %p4341_p6 }
  0x30   :  { %p4344_p9 = pnand %p4343_p8, %p4337_p5 }
  0x32   :  { %4347 = shalt.err (!%p4344_p9)
}
  0x33   :  { %s4383_s1 = smov 192   ;;  %s4384_s18 = smov 12  }
  0x34   :  { %61 = dma.hbm_to_vmem [thread:$0]  %s5125_s3, 6144, %s56_s16, [#allocation5], %s4383_s1, %s4383_s1, %s4384_s18  }
  0x35   :  { %s4385_s19 = smov [#allocation7]   ;;  %s4348_s17 = scalar_lea.hbm %s5126_s4, 3072 }
  0x36   :  { %s67_s28 = sshll.u32 %s4385_s19, 4  ;;  %p4349_p10 = scmp.ne.s32.totalorder %s5126_s4, %s4348_s17  ;;  %s68_s28 = int_to_ptr.vmem [resolvable:$true] %s67_s28 }
  0x37   :  { %p4352_p11 = scmp.lt.u32.totalorder %s4348_s17, %s5126_s4 }
  0x39   :  { %p4354_p12 = pnand %p4352_p11, %p4349_p10 }
  0x3b   :  { %4357 = shalt.err (!%p4354_p12)
}
  0x3c   :  { %s4358_s24 = scalar_lea.vmem %s68_s28, 3072  ;;  %p4363_p0 = scmp.lt.s32.totalorder %s68_s28, %s68_s28 }
  0x3d   :  { %p4359_p13 = scmp.ne.s32.totalorder %s68_s28, %s4358_s24  ;;  %p4364_p1 = scmp.lt.s32.totalorder %s4358_s24, %s4358_s24 }
  0x3f   :  { %p4365_p2 = por %p4364_p1, %p4363_p0 }
  0x41   :  { %p4366_p3 = pnand %p4365_p2, %p4359_p13 }
  0x43   :  { %4369 = shalt.err (!%p4366_p3)
}
  0x44   :  { %73 = dma.hbm_to_vmem [thread:$0]  %s5126_s4, 3072, %s68_s28, [#allocation8], %s4383_s1, %s4383_s1, %s4384_s18  }
  0x45   :  { %4370 = dma.done.wait [#allocation3], 1536  }
  0x46   :  { %4371 = vsyncadd [#allocation3], 4294965760 }
  0x47   :  { %4372 = dma.done.wait [#allocation5], 30720  }
  0x48   :  { %4373 = vsyncadd [#allocation5], 4294936576 }
  0x49   :  { %4374 = dma.done.wait [#allocation8], 3072  }
  0x4a   :  { %4375 = vsyncadd [#allocation8], 4294964224  ;;  %v4386_v0 = vmov 0   ;;  %v3872_v1 = vld [vmem:[#allocation2 + $0x4] ss:$48 sps:$4 sm:$0xff]   ;;  %v153_v4 = vld [vmem:[%s5122_s0 + $0x8] sm:$0xff] }
  0x4b   :  { %269 = vmatprep.mubr.bf16.mxu0 %v4386_v0  ;;  %322 = vmatprep.mubr.bf16.mxu1 %v4386_v0  ;;  %v3874_v2 = vld [vmem:[#allocation2] ss:$48 sps:$4 sm:$0xff]   ;;  %vm230_vm0 = vcmask 130048   ;;  %v3877_v7 = vld [vmem:[#allocation2 + $0x14] ss:$48 sps:$4 sm:$0xff]   ;;  %v155_v12 = vld [vmem:[%s5122_s0 + $0x18] sm:$0xff] }
  0x4c   :  { %v152_v3 = vld [vmem:[%s5122_s0] sm:$0xff]  ;;  %237 = vmatprep.subr.bf16.mxu0 %v3872_v1  ;;  %v154_v8 = vld [vmem:[%s5122_s0 + $0x10] sm:$0xff]  ;;  %v3881_v10 = vld [vmem:[#allocation2 + $0xc] ss:$48 sps:$4 sm:$0xff]   ;;  %vm4387_vm3 = vmmov 1   ;;  %s4389_s25 = smov 120  }
  0x4d   :  { %v156_v5 = vpack.c.bf16 %v153_v4, %v152_v3  ;;  %238 = vmatpush1.bf16.msra.mxu0 %v3874_v2  ;;  %v3875_v6 = vld [vmem:[#allocation2 + $0x10] ss:$48 sps:$4 sm:$0xff]   ;;  %v3880_v9 = vld [vmem:[#allocation2 + $0x24] ss:$48 sps:$4 sm:$0xff]   ;;  %v3883_v11 = vld [vmem:[#allocation2 + $0x8] ss:$48 sps:$4 sm:$0xff]   ;;  %290 = vmatprep.subr.bf16.mxu1 %v3881_v10  ;;  %v157_v15 = vpack.c.bf16 %v155_v12, %v154_v8 }
  0x4e   :  { %343 = vmatprep.subr.bf16.mxu0 %v3877_v7  ;;  %v3886_v13 = vld [vmem:[#allocation2 + $0x1c] ss:$48 sps:$4 sm:$0xff]   ;;  %291 = vmatpush1.bf16.msra.mxu1 %v3883_v11  ;;  %v3884_v14 = vld [vmem:[#allocation2 + $0x18] ss:$48 sps:$4 sm:$0xff]   ;;  %v3878_v17 = vld [vmem:[#allocation2 + $0x20] ss:$48 sps:$4 sm:$0xff]  }
  0x4f   :  { %396 = vmatprep.subr.bf16.mxu1 %v3886_v13  ;;  %v3889_v16 = vld [vmem:[#allocation2 + $0x2c] ss:$48 sps:$4 sm:$0xff]   ;;  %v3887_v19 = vld [vmem:[#allocation2 + $0x28] ss:$48 sps:$4 sm:$0xff]  }
  0x50   :  { %3457 = vmatmul.mubr.msk.bf16.vlgmr.msra.gmra.mrb[0].mxu0 %vm230_vm0, %v156_v5  ;;  %v3892_v18 = vld [vmem:[#allocation4 + $0x4] ss:$24 sps:$4 sm:$0xff]   ;;  %v3890_v21 = vld [vmem:[#allocation4] ss:$24 sps:$4 sm:$0xff]   ;;  %v3898_v22 = vld [vmem:[#allocation4 + $0x34] ss:$24 sps:$4 sm:$0xff]  }
  0x51   :  { %344 = vmatpush1.bf16.msra.mxu0 %v3875_v6  ;;  %279 = vmatprep.mubr.bf16.mxu0 %v4386_v0  ;;  %v3895_v20 = vld [vmem:[#allocation4 + $0xc] ss:$24 sps:$4 sm:$0xff]   ;;  %v3896_v23 = vld [vmem:[#allocation4 + $0x30] ss:$24 sps:$4 sm:$0xff]   ;;  %v3901_v25 = vld [vmem:[#allocation4 + $0x3c] ss:$24 sps:$4 sm:$0xff]  }
  0x52   :  { %449 = vmatprep.subr.bf16.mxu0 %v3880_v9  ;;  %3459 = vmatmul.mubr.msk.bf16.vlgmr.msra.gmra.mrb[0].mxu1 %vm230_vm0, %v156_v5  ;;  %v3893_v24 = vld [vmem:[#allocation4 + $0x8] ss:$24 sps:$4 sm:$0xff]   ;;  %v3899_v26 = vld [vmem:[#allocation4 + $0x38] ss:$24 sps:$4 sm:$0xff]   ;;  %v3904_v27 = vld [vmem:[#allocation4 + $0x64] ss:$24 sps:$4 sm:$0xff]  }
  0x53   :  { %332 = vmatprep.mubr.bf16.mxu1 %v4386_v0  ;;  %397 = vmatpush1.bf16.msra.mxu1 %v3884_v14  ;;  %v3907_v28 = vld [vmem:[#allocation4 + $0x6c] ss:$24 sps:$4 sm:$0xff]   ;;  %v3902_v29 = vld [vmem:[#allocation4 + $0x60] ss:$24 sps:$4 sm:$0xff]   ;;  %v3913_v32 = vld [vmem:[#allocation4 + $0x9c] ss:$24 sps:$4 sm:$0xff]  }
  0x54   :  { %502 = vmatprep.subr.bf16.mxu1 %v3889_v16  ;;  %v3905_v30 = vld [vmem:[#allocation4 + $0x68] ss:$24 sps:$4 sm:$0xff]   ;;  %v3910_v31 = vld [vmem:[#allocation4 + $0x94] ss:$24 sps:$4 sm:$0xff]   ;;  %v3911_v34 = vld [vmem:[#allocation4 + $0x98] ss:$24 sps:$4 sm:$0xff]  }
  0x55   :  { %v3908_v33 = vld [vmem:[#allocation4 + $0x90] ss:$24 sps:$4 sm:$0xff]   ;;  %v3916_v35 = vld [vmem:[#allocation4 + $0xc4] ss:$24 sps:$4 sm:$0xff]   ;;  %v3914_v37 = vld [vmem:[#allocation4 + $0xc0] ss:$24 sps:$4 sm:$0xff]  }
  0x56   :  { %v3919_v36 = vld [vmem:[#allocation4 + $0xcc] ss:$24 sps:$4 sm:$0xff]   ;;  %v3917_v38 = vld [vmem:[#allocation4 + $0xc8] ss:$24 sps:$4 sm:$0xff]   ;;  %v3925_v40 = vld [vmem:[#allocation4 + $0xfc] ss:$24 sps:$4 sm:$0xff]  }
  0x57   :  { %v3922_v39 = vld [vmem:[#allocation4 + $0xf4] ss:$24 sps:$4 sm:$0xff]   ;;  %v3920_v41 = vld [vmem:[#allocation4 + $0xf0] ss:$24 sps:$4 sm:$0xff]   ;;  %v3928_v43 = vld [vmem:[#allocation4 + $0x124] ss:$24 sps:$4 sm:$0xff]  }
  0x58   :  { %3458 = vmatmul.mubr.msk.bf16.gmra.mrb[4].mxu0 %vm230_vm0, %v157_v15  ;;  %v3923_v42 = vld [vmem:[#allocation4 + $0xf8] ss:$24 sps:$4 sm:$0xff]   ;;  %v3931_v44 = vld [vmem:[#allocation4 + $0x12c] ss:$24 sps:$4 sm:$0xff]   ;;  %v3929_v46 = vld [vmem:[#allocation4 + $0x128] ss:$24 sps:$4 sm:$0xff]  }
  0x59   :  { %375 = vmatprep.mubr.bf16.mxu0 %v4386_v0  ;;  %v3926_v45 = vld [vmem:[#allocation4 + $0x120] ss:$24 sps:$4 sm:$0xff]   ;;  %v3934_v47 = vld [vmem:[#allocation4 + $0x154] ss:$24 sps:$4 sm:$0xff]   ;;  %v3932_v49 = vld [vmem:[#allocation4 + $0x150] ss:$24 sps:$4 sm:$0xff]  }
  0x5a   :  { %3460 = vmatmul.mubr.msk.bf16.gmra.mrb[4].mxu1 %vm230_vm0, %v157_v15  ;;  %v3937_v48 = vld [vmem:[#allocation4 + $0x15c] ss:$24 sps:$4 sm:$0xff]   ;;  %v3935_v50 = vld [vmem:[#allocation4 + $0x158] ss:$24 sps:$4 sm:$0xff]   ;;  %v3943_v52 = vld [vmem:[#allocation4 + $0x18c] ss:$24 sps:$4 sm:$0xff]  }
  0x5b   :  { %428 = vmatprep.mubr.bf16.mxu1 %v4386_v0  ;;  %v3940_v51 = vld [vmem:[#allocation4 + $0x184] ss:$24 sps:$4 sm:$0xff]   ;;  %v3938_v53 = vld [vmem:[#allocation4 + $0x180] ss:$24 sps:$4 sm:$0xff]   ;;  %v3946_v55 = vld [vmem:[#allocation4 + $0x1b4] ss:$24 sps:$4 sm:$0xff]  }
  0x5c   :  { %v3941_v54 = vld [vmem:[#allocation4 + $0x188] ss:$24 sps:$4 sm:$0xff]   ;;  %v3949_v56 = vld [vmem:[#allocation4 + $0x1bc] ss:$24 sps:$4 sm:$0xff]   ;;  %v3947_v58 = vld [vmem:[#allocation4 + $0x1b8] ss:$24 sps:$4 sm:$0xff]  }
  0x5d   :  { %v3944_v57 = vld [vmem:[#allocation4 + $0x1b0] ss:$24 sps:$4 sm:$0xff]   ;;  %v3952_v59 = vld [vmem:[#allocation4 + $0x1e4] ss:$24 sps:$4 sm:$0xff]   ;;  %v3950_v61 = vld [vmem:[#allocation4 + $0x1e0] ss:$24 sps:$4 sm:$0xff]  }
  0x5e   :  { %v3955_v60 = vld [vmem:[#allocation4 + $0x1ec] ss:$24 sps:$4 sm:$0xff]   ;;  %v3953_v62 = vld [vmem:[#allocation4 + $0x1e8] ss:$24 sps:$4 sm:$0xff]   ;;  %v3961_v1 = vld [vmem:[#allocation4 + $0x21c] ss:$24 sps:$4 sm:$0xff]  }
  0x5f   :  { %v3958_v63 = vld [vmem:[#allocation4 + $0x214] ss:$24 sps:$4 sm:$0xff]   ;;  %v3956_v2 = vld [vmem:[#allocation4 + $0x210] ss:$24 sps:$4 sm:$0xff]   ;;  %v3964_v4 = vld [vmem:[#allocation4 + $0x244] ss:$24 sps:$4 sm:$0xff]  }
  0x60   :  { %3461 = vmatmul.mubr.msk.bf16.vlgmr.msra.gmra.mrb[8].mxu0 %vm230_vm0, %v156_v5  ;;  %v3959_v3 = vld [vmem:[#allocation4 + $0x218] ss:$24 sps:$4 sm:$0xff]   ;;  %v3965_v7 = vld [vmem:[#allocation4 + $0x248] ss:$24 sps:$4 sm:$0xff]   ;;  %v3970_v8 = vld [vmem:[#allocation4 + $0x274] ss:$24 sps:$4 sm:$0xff]  }
  0x61   :  { %450 = vmatpush1.bf16.msra.mxu0 %v3878_v17  ;;  %385 = vmatprep.mubr.bf16.mxu0 %v4386_v0  ;;  %v3962_v6 = vld [vmem:[#allocation4 + $0x240] ss:$24 sps:$4 sm:$0xff]   ;;  %v3973_v9 = vld [vmem:[#allocation4 + $0x27c] ss:$24 sps:$4 sm:$0xff]   ;;  %v3968_v10 = vld [vmem:[#allocation4 + $0x270] ss:$24 sps:$4 sm:$0xff]  }
  0x62   :  { %1947 = vmatprep.subr.bf16.mxu0 %v3892_v18  ;;  %3463 = vmatmul.mubr.msk.bf16.vlgmr.msra.gmra.mrb[8].mxu1 %vm230_vm0, %v156_v5  ;;  %v3971_v11 = vld [vmem:[#allocation4 + $0x278] ss:$24 sps:$4 sm:$0xff]   ;;  %v3976_v12 = vld [vmem:[#allocation4 + $0x2a4] ss:$24 sps:$4 sm:$0xff]   ;;  %v3982_v17 = vld [vmem:[#allocation4 + $0x2d4] ss:$24 sps:$4 sm:$0xff]  }
  0x63   :  { %438 = vmatprep.mubr.bf16.mxu1 %v4386_v0  ;;  %503 = vmatpush1.bf16.msra.mxu1 %v3887_v19  ;;  %v3979_v13 = vld [vmem:[#allocation4 + $0x2ac] ss:$24 sps:$4 sm:$0xff]   ;;  %v3974_v14 = vld [vmem:[#allocation4 + $0x2a0] ss:$24 sps:$4 sm:$0xff]   ;;  %v3980_v16 = vld [vmem:[#allocation4 + $0x2d0] ss:$24 sps:$4 sm:$0xff]  }
  0x64   :  { %2053 = vmatprep.subr.bf16.mxu1 %v3895_v20  ;;  %v3983_v18 = vld [vmem:[#allocation4 + $0x2d8] ss:$24 sps:$4 sm:$0xff]   ;;  %v3985_v19 = vld [vmem:[#allocation4 + $0x2dc] ss:$24 sps:$4 sm:$0xff]  }
  0x65   :  { %v3988_v20 = vld [vmem:[#allocation4 + $0x304] ss:$24 sps:$4 sm:$0xff]  }
  0x68   :  { %3462 = vmatmul.mubr.msk.bf16.gmra.mrb[12].mxu0 %vm230_vm0, %v157_v15 }
  0x69   :  { %481 = vmatprep.mubr.bf16.mxu0 %v4386_v0 }
  0x6a   :  { %3464 = vmatmul.mubr.msk.bf16.gmra.mrb[12].mxu1 %vm230_vm0, %v157_v15 }
  0x6b   :  { %534 = vmatprep.mubr.bf16.mxu1 %v4386_v0 }
  0x70   :  { %3465 = vmatmul.mubr.msk.bf16.vlgmr.msra.gmra.mrb[16].mxu0 %vm230_vm0, %v156_v5 }
  0x71   :  { %491 = vmatprep.mubr.bf16.mxu0 %v4386_v0  ;;  %1948 = vmatpush1.bf16.msra.mxu0 %v3890_v21  ;;  %v3991_v21 = vld [vmem:[#allocation4 + $0x30c] ss:$24 sps:$4 sm:$0xff]  }
  0x72   :  { %1949 = vmatprep.subr.bf16.mxu0 %v3898_v22  ;;  %3467 = vmatmul.mubr.msk.bf16.vlgmr.msra.gmra.mrb[16].mxu1 %vm230_vm0, %v156_v5  ;;  %v3967_v5 = vld [vmem:[#allocation4 + $0x24c] ss:$24 sps:$4 sm:$0xff]   ;;  %v99_v22 = vlaneseq }
  0x73   :  { %544 = vmatprep.mubr.bf16.mxu1 %v4386_v0  ;;  %2054 = vmatpush1.bf16.msra.mxu1 %v3893_v24 }
  0x74   :  { %2055 = vmatprep.subr.bf16.mxu1 %v3901_v25 }
  0x75   :  { %1950 = vmatpush1.bf16.msra.mxu0 %v3896_v23  ;;  %v4556_v23 = vshrl.u32 %v99_v22, 7 }
  0x76   :  { %1951 = vmatprep.subr.bf16.mxu0 %v3904_v27 }
  0x77   :  { %2056 = vmatpush1.bf16.msra.mxu1 %v3899_v26  ;;  %vm571_vm1 = vcmp.lt.s32.totalorder %v4556_v23, 1  ;;  %vm104_vm2 = vcmp.eq.s32.totalorder %v4556_v23, 0  ;;  %vm636_vm9 = vcmp.lt.s32.totalorder %v4556_v23, 7 }
  0x78   :  { %3466 = vmatmul.mubr.msk.bf16.gmra.mrb[20].mxu0 %vm230_vm0, %v157_v15  ;;  %2057 = vmatprep.subr.bf16.mxu1 %v3907_v28  ;;  %vm128_vm4 = vmxor %vm104_vm2, %vm4387_vm3 }
  0x79   :  { %1952 = vmatpush1.bf16.msra.mxu0 %v3902_v29 }
  0x7a   :  { %3468 = vmatmul.mubr.msk.bf16.gmra.mrb[20].mxu1 %vm230_vm0, %v157_v15  ;;  %1953 = vmatprep.subr.bf16.mxu0 %v3910_v31  ;;  %v3977_v15 = vld [vmem:[#allocation4 + $0x2a8] ss:$24 sps:$4 sm:$0xff]  }
  0x7b   :  { %2058 = vmatpush1.bf16.msra.mxu1 %v3905_v30 }
  0x7c   :  { %2059 = vmatprep.subr.bf16.mxu1 %v3913_v32 }
  0x7d   :  { %1954 = vmatpush1.bf16.msra.mxu0 %v3908_v33 }
  0x7e   :  { %1955 = vmatprep.subr.bf16.mxu0 %v3916_v35 }
  0x7f   :  { %2060 = vmatpush1.bf16.msra.mxu1 %v3911_v34 }
  0x80   :  { %2061 = vmatprep.subr.bf16.mxu1 %v3919_v36 }
  0x81   :  { %1956 = vmatpush1.bf16.msra.mxu0 %v3914_v37 }
  0x82   :  { %1957 = vmatprep.subr.bf16.mxu0 %v3922_v39 }
  0x83   :  { %2062 = vmatpush1.bf16.msra.mxu1 %v3917_v38 }
  0x84   :  { %2063 = vmatprep.subr.bf16.mxu1 %v3925_v40  ;;  %v102_v40 = vadd.s32 16, %v4556_v23 }
  0x85   :  { %1958 = vmatpush1.bf16.msra.mxu0 %v3920_v41 }
  0x86   :  { %1959 = vmatprep.subr.bf16.mxu0 %v3928_v43  ;;  %vm114_vm5 = vcmp.eq.s32.totalorder %v102_v40, 16 }
  0x87   :  { %2064 = vmatpush1.bf16.msra.mxu1 %v3923_v42  ;;  %vm130_vm6 = vmxor %vm114_vm5, %vm4387_vm3 }
  0x88   :  { %2065 = vmatprep.subr.bf16.mxu1 %v3931_v44 }
  0x89   :  { %1960 = vmatpush1.bf16.msra.mxu0 %v3926_v45 }
  0x8a   :  { %1961 = vmatprep.subr.bf16.mxu0 %v3934_v47 }
  0x8b   :  { %2066 = vmatpush1.bf16.msra.mxu1 %v3929_v46 }
  0x8c   :  { %2067 = vmatprep.subr.bf16.mxu1 %v3937_v48 }
  0x8d   :  { %1962 = vmatpush1.bf16.msra.mxu0 %v3932_v49 }
  0x8e   :  { %1963 = vmatprep.subr.bf16.mxu0 %v3940_v51 }
  0x8f   :  { %2068 = vmatpush1.bf16.msra.mxu1 %v3935_v50  ;;  %v4388_v50 = vmov 0.0  }
  0x90   :  { %2069 = vmatprep.subr.bf16.mxu1 %v3943_v52  ;;  %v4567_v51 = vsel %vm128_vm4, 1.0, %v4388_v50 }
  0x91   :  { %1964 = vmatpush1.bf16.msra.mxu0 %v3938_v53 }
  0x92   :  { %1965 = vmatprep.subr.bf16.mxu0 %v3946_v55 }
  0x93   :  { %2070 = vmatpush1.bf16.msra.mxu1 %v3941_v54 }
  0x94   :  { %2071 = vmatprep.subr.bf16.mxu1 %v3949_v56 }
  0x95   :  { %1966 = vmatpush1.bf16.msra.mxu0 %v3944_v57 }
  0x96   :  { %1967 = vmatprep.subr.bf16.mxu0 %v3952_v59 }
  0x97   :  { %2072 = vmatpush1.bf16.msra.mxu1 %v3947_v58 }
  0x98   :  { %2073 = vmatprep.subr.bf16.mxu1 %v3955_v60 }
  0x99   :  { %1968 = vmatpush1.bf16.msra.mxu0 %v3950_v61 }
  0x9a   :  { %1969 = vmatprep.subr.bf16.mxu0 %v3958_v63 }
  0x9b   :  { %2074 = vmatpush1.bf16.msra.mxu1 %v3953_v62 }
  0x9c   :  { %2075 = vmatprep.subr.bf16.mxu1 %v3961_v1 }
  0x9d   :  { %1970 = vmatpush1.bf16.msra.mxu0 %v3956_v2 }
  0x9e   :  { %1971 = vmatprep.subr.bf16.mxu0 %v3964_v4 }
  0x9f   :  { %2076 = vmatpush1.bf16.msra.mxu1 %v3959_v3 }
  0xa0   :  { %2077 = vmatprep.subr.bf16.mxu1 %v3967_v5 }
  0xa1   :  { %1972 = vmatpush1.bf16.msra.mxu0 %v3962_v6 }
  0xa2   :  { %1973 = vmatprep.subr.bf16.mxu0 %v3970_v8 }
  0xa3   :  { %2078 = vmatpush1.bf16.msra.mxu1 %v3965_v7 }
  0xa4   :  { %2079 = vmatprep.subr.bf16.mxu1 %v3973_v9 }
  0xa5   :  { %1974 = vmatpush1.bf16.msra.mxu0 %v3968_v10 }
  0xa6   :  { %1975 = vmatprep.subr.bf16.mxu0 %v3976_v12 }
  0xa7   :  { %2080 = vmatpush1.bf16.msra.mxu1 %v3971_v11 }
  0xa8   :  { %2081 = vmatprep.subr.bf16.mxu1 %v3979_v13 }
  0xa9   :  { %1976 = vmatpush1.bf16.msra.mxu0 %v3974_v14 }
  0xaa   :  { %1977 = vmatprep.subr.bf16.mxu0 %v3982_v17  ;;  %v4599_v17 = vsel %vm130_vm6, 1.0, %v4388_v50 }
  0xab   :  { %2082 = vmatpush1.bf16.msra.mxu1 %v3977_v15 }
  0xac   :  { %2083 = vmatprep.subr.bf16.mxu1 %v3985_v19 }
  0xad   :  { %1978 = vmatpush1.bf16.msra.mxu0 %v3980_v16 }
  0xae   :  { %2000 = vmatprep.subr.bf16.mxu0 %v3988_v20 }
  0xaf   :  { %2084 = vmatpush1.bf16.msra.mxu1 %v3983_v18 }
  0xb0   :  { %2106 = vmatprep.subr.bf16.mxu1 %v3991_v21 }
 0x123   :  { %v271_v24 = vpop.f32.mrb[0].mxu0 }
 0x124   :  { %v273_v25 = vpop.f32.mrb[1].mxu0  ;;  %v555_v27 = vrot.slane %v271_v24, 7 }
 0x125   :  { %v275_v26 = vpop.f32.mrb[2].mxu0  ;;  %v556_v30 = vrot.slane %v273_v25, 7  ;;  %v324_v34 = vpop.f32.mrb[0].mxu1 }
 0x126   :  { %v559_v28 = vrot.slane %v275_v26, 7  ;;  %v277_v29 = vpop.f32.mrb[3].mxu0  ;;  %v326_v35 = vpop.f32.mrb[1].mxu1  ;;  %v557_v41 = vrot.slane %v324_v34, 7 }
 0x127   :  { %v560_v31 = vrot.slane %v277_v29, 7  ;;  %v328_v37 = vpop.f32.mrb[2].mxu1  ;;  %v558_v46 = vrot.slane %v326_v35, 7 }
 0x128   :  { %v580_v32 = vsel %vm571_vm1, %v555_v27, %v559_v28  ;;  %v561_v42 = vrot.slane %v328_v37, 7  ;;  %v330_v43 = vpop.f32.mrb[3].mxu1 }
 0x129   :  { %v581_v33 = vsel %vm571_vm1, %v556_v30, %v560_v31  ;;  %v562_v47 = vrot.slane %v330_v43, 7 }
 0x12a   :  { %v582_v53 = vsel %vm571_vm1, %v557_v41, %v561_v42 }
 0x12b   :  { %v281_v36 = vpop.f32.mrb[4].mxu0  ;;  %v583_v56 = vsel %vm571_vm1, %v558_v46, %v562_v47 }
 0x12c   :  { %v563_v38 = vrot.slane %v281_v36, 7  ;;  %v283_v39 = vpop.f32.mrb[5].mxu0 }
 0x12d   :  { %v564_v44 = vrot.slane %v283_v39, 7  ;;  %v285_v45 = vpop.f32.mrb[6].mxu0  ;;  %v334_v62 = vpop.f32.mrb[4].mxu1 }
 0x12e   :  { %v567_v48 = vrot.slane %v285_v45, 7  ;;  %v287_v49 = vpop.f32.mrb[7].mxu0  ;;  %v576_v52 = vsel %vm571_vm1, %v559_v28, %v563_v38  ;;  %v565_v1 = vrot.slane %v334_v62, 7  ;;  %v336_v2 = vpop.f32.mrb[5].mxu1  ;;  %v101_v45 = vadd.s32 8, %v4556_v23 }
 0x12f   :  { %v568_v54 = vrot.slane %v287_v49, 7  ;;  %v577_v55 = vsel %vm571_vm1, %v560_v31, %v564_v44  ;;  %v566_v4 = vrot.slane %v336_v2, 7  ;;  %v338_v5 = vpop.f32.mrb[6].mxu1  ;;  %v689_v49 = vsub.s32 0, %v4556_v23 }
 0x130   :  { %v584_v57 = vsel %vm571_vm1, %v567_v48, %v555_v27  ;;  %v572_v58 = vsel %vm571_vm1, %v563_v38, %v567_v48  ;;  %v569_v8 = vrot.slane %v338_v5, 7  ;;  %v340_v9 = vpop.f32.mrb[7].mxu1  ;;  %v578_v10 = vsel %vm571_vm1, %v561_v42, %v565_v1 }
 0x131   :  { %v588_v59 = vmul.f32 %v4567_v51, %v584_v57  ;;  %v585_v60 = vsel %vm571_vm1, %v568_v54, %v556_v30  ;;  %v573_v61 = vsel %vm571_vm1, %v564_v44, %v568_v54  ;;  %v570_v13 = vrot.slane %v340_v9, 7 }
 0x132   :  { %v589_v63 = vmul.f32 %v4567_v51, %v585_v60  ;;  %v579_v14 = vsel %vm571_vm1, %v562_v47, %v566_v4  ;;  %v586_v18 = vsel %vm571_vm1, %v569_v8, %v557_v41  ;;  %v574_v19 = vsel %vm571_vm1, %v565_v1, %v569_v8 }
 0x133   :  { %v377_v3 = vpop.f32.mrb[8].mxu0  ;;  %v590_v21 = vmul.f32 %v4567_v51, %v586_v18  ;;  %v587_v22 = vsel %vm571_vm1, %v570_v13, %v558_v46  ;;  %v575_v24 = vsel %vm571_vm1, %v566_v4, %v570_v13  ;;  %v596_v27 = vmul.f32 %v4599_v17, %v576_v52 }
 0x134   :  { %v4588_v6 = vadd.f32 %v588_v59, %v377_v3  ;;  %v379_v7 = vpop.f32.mrb[9].mxu0  ;;  %v591_v25 = vmul.f32 %v4567_v51, %v587_v22  ;;  %v597_v31 = vmul.f32 %v4599_v17, %v577_v55  ;;  %v598_v43 = vmul.f32 %v4599_v17, %v578_v10  ;;  %v685_v55 = vld [vmem:[%s5128_s6] sm:$0xf] }
 0x135   :  { %v4592_v11 = vadd.f32 %v589_v63, %v379_v7  ;;  %v381_v12 = vpop.f32.mrb[10].mxu0  ;;  %v430_v26 = vpop.f32.mrb[8].mxu1  ;;  %v599_v46 = vmul.f32 %v4599_v17, %v579_v14  ;;  %v103_v47 = vadd.s32 24, %v4556_v23  ;;  %vm109_vm7 = vcmp.eq.s32.totalorder %v101_v45, 15 }
 0x136   :  { %v4596_v15 = vadd.f32 %v580_v32, %v381_v12  ;;  %v383_v16 = vpop.f32.mrb[11].mxu0  ;;  %v4614_v28 = vadd.f32 %v590_v21, %v430_v26  ;;  %v432_v29 = vpop.f32.mrb[9].mxu1  ;;  %v693_v59 = vsub.s32 1, %v4556_v23  ;;  %v4656_v3 = vrot.slane %v685_v55, %v689_v49  ;;  %vm141_vm10 = vmxor %vm109_vm7, %vm4387_vm3 }
 0x137   :  { %v4605_v20 = vadd.f32 %v581_v33, %v383_v16  ;;  %v4617_v32 = vadd.f32 %v591_v25, %v432_v29  ;;  %v434_v33 = vpop.f32.mrb[10].mxu1  ;;  %vm123_vm8 = vcmp.eq.s32.totalorder %v103_v47, 31  ;;  %v697_v8 = vsub.s32 2, %v4556_v23 }
 0x138   :  { %v4621_v36 = vadd.f32 %v582_v53, %v434_v33  ;;  %v436_v37 = vpop.f32.mrb[11].mxu1  ;;  %vm143_vm11 = vmxor %vm123_vm8, %vm4387_vm3  ;;  %v701_v9 = vsub.s32 3, %v4556_v23  ;;  %v4668_v12 = vrot.slane %v685_v55, %v693_v59 }
 0x139   :  { %v4625_v40 = vadd.f32 %v583_v56, %v436_v37  ;;  %v4680_v21 = vsel %vm143_vm11, 1.0, %v4388_v50 }
 0x13a   :  { %v4690_v29 = vrot.slane %v685_v55, %v701_v9 }
 0x13b   :  { %v387_v30 = vpop.f32.mrb[12].mxu0 }
 0x13c   :  { %v4619_v34 = vadd.f32 %v596_v27, %v387_v30  ;;  %v389_v35 = vpop.f32.mrb[13].mxu0  ;;  %v4688_v27 = vrot.slane %v685_v55, %v697_v8 }
 0x13d   :  { %v4623_v38 = vadd.f32 %v597_v31, %v389_v35  ;;  %v391_v39 = vpop.f32.mrb[14].mxu0  ;;  %v440_v48 = vpop.f32.mrb[12].mxu1 }
 0x13e   :  { %v4627_v41 = vadd.f32 %v572_v58, %v391_v39  ;;  %v393_v42 = vpop.f32.mrb[15].mxu0  ;;  %v4636_v52 = vadd.f32 %v598_v43, %v440_v48  ;;  %v442_v53 = vpop.f32.mrb[13].mxu1 }
 0x13f   :  { %v4630_v44 = vadd.f32 %v573_v61, %v393_v42  ;;  %v4643_v56 = vadd.f32 %v599_v46, %v442_v53  ;;  %v444_v57 = vpop.f32.mrb[14].mxu1 }
 0x140   :  { %v4648_v60 = vadd.f32 %v574_v19, %v444_v57  ;;  %v446_v61 = vpop.f32.mrb[15].mxu1  ;;  %v4677_v19 = vsel %vm141_vm10, 1.0, %v4388_v50 }
 0x141   :  { %v4651_v63 = vadd.f32 %v575_v24, %v446_v61 }
 0x143   :  { %v4638_v54 = vpop.f32.mrb[16].mxu0 }
 0x144   :  { %v4645_v58 = vpop.f32.mrb[17].mxu0  ;;  %v620_v1 = vrot.slane %v4638_v54, 1 }
 0x145   :  { %v487_v62 = vpop.f32.mrb[18].mxu0  ;;  %v621_v5 = vrot.slane %v4645_v58, 1  ;;  %v4673_v16 = vpop.f32.mrb[16].mxu1 }
 0x146   :  { %v624_v2 = vrot.slane %v487_v62, 1  ;;  %v489_v4 = vpop.f32.mrb[19].mxu0  ;;  %v4682_v22 = vpop.f32.mrb[17].mxu1 }
 0x147   :  { %v625_v7 = vrot.slane %v489_v4, 1  ;;  %v4686_v26 = vpop.f32.mrb[18].mxu1  ;;  %v623_v50 = vrot.slane %v4682_v22, 1  ;;  %v3998_v22 = vld [vmem:[#allocation4 + $0x360] ss:$24 sps:$4 sm:$0xff]  }
 0x148   :  { %v645_v10 = vsel %vm636_vm9, %v620_v1, %v624_v2  ;;  %v626_v33 = vrot.slane %v4686_v26, 1  ;;  %v4695_v35 = vpop.f32.mrb[19].mxu1 }
 0x149   :  { %v669_v13 = vadd.f32 %v645_v10, %v4588_v6  ;;  %v646_v14 = vsel %vm636_vm9, %v621_v5, %v625_v7  ;;  %v622_v6 = vrot.slane %v4673_v16, 1  ;;  %v627_v43 = vrot.slane %v4695_v35, 1 }
 0x14a   :  { %v670_v18 = vadd.f32 %v646_v14, %v4592_v11 }
 0x14b   :  { %v707_v24 = vadd.f32 %v4656_v3, %v669_v13  ;;  %v493_v25 = vpop.f32.mrb[20].mxu0 }
 0x14c   :  { %v708_v11 = vadd.f32 %v4668_v12, %v670_v18  ;;  %v628_v30 = vrot.slane %v493_v25, 1  ;;  %v495_v31 = vpop.f32.mrb[21].mxu0 }
 0x14d   :  { %vm723_vm12 = vcmp.ge.f32.partialorder %v707_v24, 0.0  ;;  %v739_v37 = vmul.f32 0.1, %v707_v24  ;;  %v629_v39 = vrot.slane %v495_v31, 1  ;;  %v497_v42 = vpop.f32.mrb[22].mxu0  ;;  %v4719_v10 = vpop.f32.mrb[20].mxu1 }
 0x14e   :  { %v641_v45 = vsel %vm636_vm9, %v624_v2, %v628_v30  ;;  %v632_v46 = vrot.slane %v497_v42, 1  ;;  %v499_v47 = vpop.f32.mrb[23].mxu0  ;;  %vm724_vm13 = vcmp.ge.f32.partialorder %v708_v11, 0.0  ;;  %v740_v48 = vmul.f32 0.1, %v708_v11  ;;  %v4731_v14 = vpop.f32.mrb[21].mxu1 }
 0x14f   :  { %v755_v53 = vsel %vm723_vm12, %v707_v24, %v739_v37  ;;  %v657_v54 = vmul.f32 %v4677_v19, %v641_v45  ;;  %v642_v55 = vsel %vm636_vm9, %v625_v7, %v629_v39  ;;  %v633_v57 = vrot.slane %v499_v47, 1  ;;  %v4739_v25 = vpop.f32.mrb[22].mxu1 }
 0x150   :  { %771 = vst [vmem:[%s5133_s11] sm:$0xff] %v755_v53  ;;  %v658_v58 = vmul.f32 %v4677_v19, %v642_v55  ;;  %v637_v61 = vsel %vm636_vm9, %v628_v30, %v632_v46  ;;  %v649_v62 = vsel %vm636_vm9, %v632_v46, %v620_v1  ;;  %v756_v2 = vsel %vm724_vm13, %v708_v11, %v740_v48  ;;  %v4750_v31 = vpop.f32.mrb[23].mxu1 }
 0x151   :  { %v673_v4 = vadd.f32 %v657_v54, %v4596_v15  ;;  %v665_v8 = vmul.f32 %v4680_v21, %v649_v62  ;;  %v677_v7 = vadd.f32 %v637_v61, %v4619_v34  ;;  %v638_v9 = vsel %vm636_vm9, %v629_v39, %v633_v57  ;;  %772 = vst [vmem:[%s5133_s11 + $0x8] sm:$0xff] %v756_v2  ;;  %v3989_v61 = vld [vmem:[#allocation4 + $0x308] ss:$24 sps:$4 sm:$0xff]  }
 0x152   :  { %v674_v13 = vadd.f32 %v658_v58, %v4605_v20  ;;  %v650_v1 = vsel %vm636_vm9, %v633_v57, %v621_v5  ;;  %v678_v15 = vadd.f32 %v638_v9, %v4623_v38  ;;  %v647_v34 = vsel %vm636_vm9, %v622_v6, %v626_v33  ;;  %v3986_v57 = vld [vmem:[#allocation4 + $0x300] ss:$24 sps:$4 sm:$0xff]   ;;  %v3994_v9 = vld [vmem:[#allocation4 + $0x334] ss:$24 sps:$4 sm:$0xff]  }
 0x153   :  { %v711_v18 = vadd.f32 %v4656_v3, %v673_v4  ;;  %v681_v24 = vadd.f32 %v665_v8, %v4627_v41  ;;  %v4736_v20 = vadd.f32 %v4656_v3, %v677_v7  ;;  %v666_v5 = vmul.f32 %v4680_v21, %v650_v1 }
 0x154   :  { %v716_v38 = vadd.f32 %v4668_v12, %v678_v15  ;;  %v712_v11 = vadd.f32 %v4668_v12, %v674_v13  ;;  %v671_v30 = vadd.f32 %v647_v34, %v4614_v28  ;;  %v648_v41 = vsel %vm636_vm9, %v623_v50, %v627_v43 }
 0x155   :  { %vm727_vm14 = vcmp.ge.f32.partialorder %v711_v18, 0.0  ;;  %v743_v37 = vmul.f32 0.1, %v711_v18  ;;  %v682_v39 = vadd.f32 %v666_v5, %v4630_v44  ;;  %v672_v42 = vadd.f32 %v648_v41, %v4617_v32 }
 0x156   :  { %vm728_vm15 = vcmp.ge.f32.partialorder %v712_v11, 0.0  ;;  %v744_v45 = vmul.f32 0.1, %v712_v11  ;;  %vm732_vm0 = vcmp.ge.f32.partialorder %v716_v38, 0.0  ;;  %v748_v46 = vmul.f32 0.1, %v716_v38 }
 0x157   :  { %v759_v28 = vsel %vm727_vm14, %v711_v18, %v743_v37  ;;  %v720_v47 = vadd.f32 %v4668_v12, %v682_v39  ;;  %v709_v48 = vadd.f32 %v4688_v27, %v671_v30  ;;  %v4757_v54 = vadd.f32 %v4690_v29, %v672_v42 }
 0x158   :  { %v760_v55 = vsel %vm728_vm15, %v712_v11, %v744_v45  ;;  %775 = vst [vmem:[%s5133_s11 + $0x20] sm:$0xff] %v759_v28  ;;  %v4762_v44 = vpack.c.bf16 %v759_v28, %v755_v53  ;;  %v764_v32 = vsel %vm732_vm0, %v716_v38, %v748_v46  ;;  %v630_v58 = vrot.slane %v4719_v10, 1  ;;  %v3997_v10 = vld [vmem:[#allocation4 + $0x33c] ss:$24 sps:$4 sm:$0xff]   ;;  %v4003_v38 = vld [vmem:[#allocation4 + $0x36c] ss:$24 sps:$4 sm:$0xff]  }
 0x159   :  { %776 = vst [vmem:[%s5133_s11 + $0x28] sm:$0xff] %v760_v55  ;;  %v4768_v12 = vpack.c.bf16 %v760_v55, %v756_v2  ;;  %vm736_vm2 = vcmp.ge.f32.partialorder %v720_v47, 0.0  ;;  %v752_v62 = vmul.f32 0.1, %v720_v47  ;;  %780 = vst [vmem:[%s5133_s11 + $0x48] sm:$0xff] %v764_v32  ;;  %vm725_vm3 = vcmp.ge.f32.partialorder %v709_v48, 0.0 }
 0x15a   :  { %v741_v4 = vmul.f32 0.1, %v709_v48  ;;  %v643_v53 = vsel %vm636_vm9, %v626_v33, %v630_v58  ;;  %v631_v8 = vrot.slane %v4731_v14, 1  ;;  %v634_v7 = vrot.slane %v4739_v25, 1  ;;  %v3995_v14 = vld [vmem:[#allocation4 + $0x338] ss:$24 sps:$4 sm:$0xff]  }
 0x15b   :  { %1979 = vmatprep.mubr.bf16.mxu0 %v4768_v12  ;;  %2085 = vmatprep.mubr.bf16.mxu1 %v4768_v12  ;;  %v768_v2 = vsel %vm736_vm2, %v720_v47, %v752_v62  ;;  %v659_v13 = vmul.f32 %v4677_v19, %v643_v53  ;;  %v635_v1 = vrot.slane %v4750_v31, 1  ;;  %v719_v26 = vadd.f32 %v4656_v3, %v681_v24  ;;  %v3992_v3 = vld [vmem:[#allocation4 + $0x330] ss:$24 sps:$4 sm:$0xff]   ;;  %v4000_v25 = vld [vmem:[#allocation4 + $0x364] ss:$24 sps:$4 sm:$0xff]  }
 0x15c   :  { %1980 = vmatmul.mubr.bf16.vlgmr.msra.gmra.mrb[24].mxu0 %v4762_v44  ;;  %2086 = vmatmul.mubr.bf16.vlgmr.msra.gmra.mrb[24].mxu1 %v4762_v44  ;;  %784 = vst [vmem:[%s5133_s11 + $0x68] sm:$0xff] %v768_v2  ;;  %v4789_v33 = vpack.c.bf16 %v768_v2, %v764_v32  ;;  %v757_v15 = vsel %vm725_vm3, %v709_v48, %v741_v4  ;;  %vm731_vm4 = vcmp.ge.f32.partialorder %v4736_v20, 0.0  ;;  %v747_v11 = vmul.f32 0.1, %v4736_v20  ;;  %v4006_v47 = vld [vmem:[#allocation4 + $0x394] ss:$24 sps:$4 sm:$0xff]  }
 0x15d   :  { %v644_v34 = vsel %vm636_vm9, %v627_v43, %v631_v8  ;;  %2001 = vmatpush1.bf16.msra.mxu0 %v3986_v57  ;;  %2107 = vmatpush1.bf16.msra.mxu1 %v3989_v61  ;;  %773 = vst [vmem:[%s5133_s11 + $0x10] sm:$0xff] %v757_v15  ;;  %v675_v18 = vadd.f32 %v659_v13, %v4621_v36  ;;  %vm735_vm5 = vcmp.ge.f32.partialorder %v719_v26, 0.0  ;;  %v751_v31 = vmul.f32 0.1, %v719_v26  ;;  %v4009_v48 = vld [vmem:[#allocation4 + $0x39c] ss:$24 sps:$4 sm:$0xff]  }
 0x15e   :  { %v660_v24 = vmul.f32 %v4677_v19, %v644_v34  ;;  %v639_v35 = vsel %vm636_vm9, %v630_v58, %v634_v7  ;;  %1989 = vmatprep.mubr.bf16.mxu0 %v4789_v33  ;;  %2095 = vmatprep.mubr.bf16.mxu1 %v4789_v33  ;;  %v651_v43 = vsel %vm636_vm9, %v634_v7, %v622_v6  ;;  %vm726_vm7 = vcmp.ge.f32.partialorder %v4757_v54, 0.0  ;;  %v4007_v61 = vld [vmem:[#allocation4 + $0x398] ss:$24 sps:$4 sm:$0xff]   ;;  %v4012_v7 = vld [vmem:[#allocation4 + $0x3c4] ss:$24 sps:$4 sm:$0xff]  }
 0x15f   :  { %v679_v5 = vadd.f32 %v639_v35, %v4636_v52  ;;  %v640_v36 = vsel %vm636_vm9, %v631_v8, %v635_v1  ;;  %2002 = vmatprep.subr.bf16.mxu0 %v3994_v9  ;;  %2108 = vmatprep.subr.bf16.mxu1 %v3997_v10  ;;  %v713_v30 = vadd.f32 %v4688_v27, %v675_v18  ;;  %v742_v55 = vmul.f32 0.1, %v4757_v54  ;;  %v4015_v10 = vld [vmem:[#allocation4 + $0x3cc] ss:$24 sps:$4 sm:$0xff]   ;;  %v4013_v34 = vld [vmem:[#allocation4 + $0x3c8] ss:$24 sps:$4 sm:$0xff]  }
 0x160   :  { %v676_v41 = vadd.f32 %v660_v24, %v4625_v40  ;;  %v667_v16 = vmul.f32 %v4680_v21, %v651_v43  ;;  %v652_v52 = vsel %vm636_vm9, %v635_v1, %v623_v50  ;;  %v680_v37 = vadd.f32 %v640_v36, %v4643_v56  ;;  %v4001_v50 = vld [vmem:[#allocation4 + $0x368] ss:$24 sps:$4 sm:$0xff]   ;;  %v4018_v18 = vld [vmem:[#allocation4 + $0x3f4] ss:$24 sps:$4 sm:$0xff]  }
 0x161   :  { %v717_v6 = vadd.f32 %v4688_v27, %v679_v5  ;;  %v763_v39 = vsel %vm731_vm4, %v4736_v20, %v747_v11  ;;  %2003 = vmatpush1.bf16.msra.mxu0 %v3992_v3  ;;  %2109 = vmatpush1.bf16.msra.mxu1 %v3995_v14  ;;  %vm729_vm6 = vcmp.ge.f32.partialorder %v713_v30, 0.0  ;;  %v745_v40 = vmul.f32 0.1, %v713_v30  ;;  %v4021_v24 = vld [vmem:[#allocation4 + $0x3fc] ss:$24 sps:$4 sm:$0xff]  }
 0x162   :  { %v683_v42 = vadd.f32 %v667_v16, %v4648_v60  ;;  %v668_v45 = vmul.f32 %v4680_v21, %v652_v52  ;;  %779 = vst [vmem:[%s5133_s11 + $0x40] sm:$0xff] %v763_v39  ;;  %2004 = vmatprep.subr.bf16.mxu0 %v4000_v25  ;;  %2110 = vmatprep.subr.bf16.mxu1 %v4003_v38  ;;  %v4016_v43 = vld [vmem:[#allocation4 + $0x3f0] ss:$24 sps:$4 sm:$0xff]   ;;  %v4024_v25 = vld [vmem:[#allocation4 + $0x424] ss:$24 sps:$4 sm:$0xff]  }
 0x163   :  { %v718_v56 = vadd.f32 %v4690_v29, %v680_v37  ;;  %v767_v20 = vsel %vm735_vm5, %v719_v26, %v751_v31  ;;  %v714_v46 = vadd.f32 %v4690_v29, %v676_v41  ;;  %v761_v57 = vsel %vm729_vm6, %v713_v30, %v745_v40  ;;  %v4019_v5 = vld [vmem:[#allocation4 + $0x3f8] ss:$24 sps:$4 sm:$0xff]   ;;  %v4027_v38 = vld [vmem:[#allocation4 + $0x42c] ss:$24 sps:$4 sm:$0xff]   ;;  %v4025_v11 = vld [vmem:[#allocation4 + $0x428] ss:$24 sps:$4 sm:$0xff]  }
 0x164   :  { %v684_v60 = vadd.f32 %v668_v45, %v4651_v63  ;;  %783 = vst [vmem:[%s5133_s11 + $0x60] sm:$0xff] %v767_v20  ;;  %v4839_v28 = vpack.c.bf16 %v767_v20, %v763_v39  ;;  %777 = vst [vmem:[%s5133_s11 + $0x30] sm:$0xff] %v761_v57  ;;  %v4846_v58 = vpack.c.bf16 %v761_v57, %v757_v15  ;;  %v4004_v63 = vld [vmem:[#allocation4 + $0x390] ss:$24 sps:$4 sm:$0xff]   ;;  %vm733_vm11 = vcmp.ge.f32.partialorder %v717_v6, 0.0 }
 0x165   :  { %vm730_vm8 = vcmp.ge.f32.partialorder %v714_v46, 0.0  ;;  %v746_v32 = vmul.f32 0.1, %v714_v46  ;;  %vm734_vm10 = vcmp.ge.f32.partialorder %v718_v56, 0.0  ;;  %v758_v62 = vsel %vm726_vm7, %v4757_v54, %v742_v55  ;;  %2005 = vmatpush1.bf16.msra.mxu0 %v3998_v22  ;;  %2111 = vmatpush1.bf16.msra.mxu1 %v4001_v50  ;;  %v4010_v15 = vld [vmem:[#allocation4 + $0x3c0] ss:$24 sps:$4 sm:$0xff]  }
 0x166   :  { %1990 = vmatmul.mubr.bf16.gmra.mrb[28].mxu0 %v4839_v28  ;;  %2096 = vmatmul.mubr.bf16.gmra.mrb[28].mxu1 %v4839_v28  ;;  %v722_v4 = vadd.f32 %v4690_v29, %v684_v60  ;;  %v750_v53 = vmul.f32 0.1, %v718_v56  ;;  %v721_v8 = vadd.f32 %v4688_v27, %v683_v42  ;;  %774 = vst [vmem:[%s5133_s11 + $0x18] sm:$0xff] %v758_v62  ;;  %v749_v9 = vmul.f32 0.1, %v717_v6 }
 0x167   :  { %v762_v2 = vsel %vm730_vm8, %v714_v46, %v746_v32  ;;  %2006 = vmatprep.subr.bf16.mxu0 %v4006_v47  ;;  %2112 = vmatprep.subr.bf16.mxu1 %v4009_v48  ;;  %v4022_v36 = vld [vmem:[#allocation4 + $0x420] ss:$24 sps:$4 sm:$0xff]   ;;  %v4030_v30 = vld [vmem:[#allocation4 + $0x454] ss:$24 sps:$4 sm:$0xff]   ;;  %v4028_v16 = vld [vmem:[#allocation4 + $0x450] ss:$24 sps:$4 sm:$0xff]  }
 0x168   :  { %778 = vst [vmem:[%s5133_s11 + $0x38] sm:$0xff] %v762_v2  ;;  %v4862_v29 = vpack.c.bf16 %v762_v2, %v758_v62  ;;  %vm738_vm12 = vcmp.ge.f32.partialorder %v722_v4, 0.0  ;;  %v754_v27 = vmul.f32 0.1, %v722_v4  ;;  %v766_v54 = vsel %vm734_vm10, %v718_v56, %v750_v53  ;;  %v4033_v41 = vld [vmem:[#allocation4 + $0x45c] ss:$24 sps:$4 sm:$0xff]  }
 0x169   :  { %782 = vst [vmem:[%s5133_s11 + $0x58] sm:$0xff] %v766_v54  ;;  %vm737_vm13 = vcmp.ge.f32.partialorder %v721_v8, 0.0  ;;  %v753_v13 = vmul.f32 0.1, %v721_v8  ;;  %v765_v1 = vsel %vm733_vm11, %v717_v6, %v749_v9  ;;  %2007 = vmatpush1.bf16.msra.mxu0 %v4004_v63  ;;  %2113 = vmatpush1.bf16.msra.mxu1 %v4007_v61  ;;  %v4031_v31 = vld [vmem:[#allocation4 + $0x458] ss:$24 sps:$4 sm:$0xff]  }
 0x16a   :  { %2032 = vmatprep.mubr.bf16.mxu0 %v4862_v29  ;;  %2138 = vmatprep.mubr.bf16.mxu1 %v4862_v29  ;;  %v770_v26 = vsel %vm738_vm12, %v722_v4, %v754_v27  ;;  %781 = vst [vmem:[%s5133_s11 + $0x50] sm:$0xff] %v765_v1  ;;  %v4036_v6 = vld [vmem:[#allocation4 + $0x484] ss:$24 sps:$4 sm:$0xff]   ;;  %v4034_v37 = vld [vmem:[#allocation4 + $0x480] ss:$24 sps:$4 sm:$0xff]  }
 0x16b   :  { %786 = vst [vmem:[%s5133_s11 + $0x78] sm:$0xff] %v770_v26  ;;  %v4876_v3 = vpack.c.bf16 %v770_v26, %v766_v54  ;;  %v769_v14 = vsel %vm737_vm13, %v721_v8, %v753_v13  ;;  %2008 = vmatprep.subr.bf16.mxu0 %v4012_v7  ;;  %2114 = vmatprep.subr.bf16.mxu1 %v4015_v10  ;;  %v4039_v52 = vld [vmem:[#allocation4 + $0x48c] ss:$24 sps:$4 sm:$0xff]   ;;  %v4037_v39 = vld [vmem:[#allocation4 + $0x488] ss:$24 sps:$4 sm:$0xff]  }
 0x16c   :  { %785 = vst [vmem:[%s5133_s11 + $0x70] sm:$0xff] %v769_v14  ;;  %v4881_v35 = vpack.c.bf16 %v769_v14, %v765_v1  ;;  %v4042_v40 = vld [vmem:[#allocation4 + $0x4b4] ss:$24 sps:$4 sm:$0xff]   ;;  %v4040_v45 = vld [vmem:[#allocation4 + $0x4b0] ss:$24 sps:$4 sm:$0xff]  }
 0x16d   :  { %2009 = vmatpush1.bf16.msra.mxu0 %v4010_v15  ;;  %2115 = vmatpush1.bf16.msra.mxu1 %v4013_v34  ;;  %v4045_v42 = vld [vmem:[#allocation4 + $0x4bc] ss:$24 sps:$4 sm:$0xff]   ;;  %v4043_v22 = vld [vmem:[#allocation4 + $0x4b8] ss:$24 sps:$4 sm:$0xff]   ;;  %v4051_v56 = vld [vmem:[#allocation4 + $0x4ec] ss:$24 sps:$4 sm:$0xff]  }
 0x16e   :  { %2010 = vmatprep.subr.bf16.mxu0 %v4018_v18  ;;  %2116 = vmatprep.subr.bf16.mxu1 %v4021_v24  ;;  %v4048_v50 = vld [vmem:[#allocation4 + $0x4e4] ss:$24 sps:$4 sm:$0xff]   ;;  %v4046_v20 = vld [vmem:[#allocation4 + $0x4e0] ss:$24 sps:$4 sm:$0xff]   ;;  %v4054_v60 = vld [vmem:[#allocation4 + $0x514] ss:$24 sps:$4 sm:$0xff]  }
 0x16f   :  { %v4049_v46 = vld [vmem:[#allocation4 + $0x4e8] ss:$24 sps:$4 sm:$0xff]   ;;  %v4057_v47 = vld [vmem:[#allocation4 + $0x51c] ss:$24 sps:$4 sm:$0xff]   ;;  %v4055_v55 = vld [vmem:[#allocation4 + $0x518] ss:$24 sps:$4 sm:$0xff]  }
 0x170   :  { %v4052_v48 = vld [vmem:[#allocation4 + $0x510] ss:$24 sps:$4 sm:$0xff]   ;;  %v4060_v57 = vld [vmem:[#allocation4 + $0x544] ss:$24 sps:$4 sm:$0xff]   ;;  %v4058_v63 = vld [vmem:[#allocation4 + $0x540] ss:$24 sps:$4 sm:$0xff]  }
 0x171   :  { %2011 = vmatpush1.bf16.msra.mxu0 %v4016_v43  ;;  %2117 = vmatpush1.bf16.msra.mxu1 %v4019_v5  ;;  %v4063_v32 = vld [vmem:[#allocation4 + $0x54c] ss:$24 sps:$4 sm:$0xff]   ;;  %v4061_v61 = vld [vmem:[#allocation4 + $0x548] ss:$24 sps:$4 sm:$0xff]   ;;  %v4069_v4 = vld [vmem:[#allocation4 + $0x57c] ss:$24 sps:$4 sm:$0xff]  }
 0x172   :  { %2012 = vmatprep.subr.bf16.mxu0 %v4024_v25  ;;  %2118 = vmatprep.subr.bf16.mxu1 %v4027_v38  ;;  %v4066_v62 = vld [vmem:[#allocation4 + $0x574] ss:$24 sps:$4 sm:$0xff]   ;;  %v4064_v53 = vld [vmem:[#allocation4 + $0x570] ss:$24 sps:$4 sm:$0xff]   ;;  %v4072_v7 = vld [vmem:[#allocation4 + $0x5a4] ss:$24 sps:$4 sm:$0xff]  }
 0x173   :  { %v4067_v8 = vld [vmem:[#allocation4 + $0x578] ss:$24 sps:$4 sm:$0xff]   ;;  %v4075_v2 = vld [vmem:[#allocation4 + $0x5ac] ss:$24 sps:$4 sm:$0xff]   ;;  %v4073_v10 = vld [vmem:[#allocation4 + $0x5a8] ss:$24 sps:$4 sm:$0xff]  }
 0x174   :  { %v4070_v9 = vld [vmem:[#allocation4 + $0x5a0] ss:$24 sps:$4 sm:$0xff]   ;;  %v4078_v27 = vld [vmem:[#allocation4 + $0x5d4] ss:$24 sps:$4 sm:$0xff]   ;;  %v4076_v13 = vld [vmem:[#allocation4 + $0x5d0] ss:$24 sps:$4 sm:$0xff]  }
 0x175   :  { %2013 = vmatpush1.bf16.msra.mxu0 %v4022_v36  ;;  %2119 = vmatpush1.bf16.msra.mxu1 %v4025_v11  ;;  %v4081_v54 = vld [vmem:[#allocation4 + $0x5dc] ss:$24 sps:$4 sm:$0xff]   ;;  %v4079_v1 = vld [vmem:[#allocation4 + $0x5d8] ss:$24 sps:$4 sm:$0xff]  }
 0x176   :  { %2014 = vmatprep.subr.bf16.mxu0 %v4030_v30  ;;  %2120 = vmatprep.subr.bf16.mxu1 %v4033_v41  ;;  %v4084_v26 = vld [vmem:[#allocation4 + $0x14] ss:$24 sps:$4 sm:$0xff]   ;;  %v4082_v15 = vld [vmem:[#allocation4 + $0x10] ss:$24 sps:$4 sm:$0xff]   ;;  %v4087_v34 = vld [vmem:[#allocation4 + $0x44] ss:$24 sps:$4 sm:$0xff]  }
 0x177   :  { %v4085_v14 = vld [vmem:[#allocation4 + $0x40] ss:$24 sps:$4 sm:$0xff]   ;;  %v4090_v18 = vld [vmem:[#allocation4 + $0x74] ss:$24 sps:$4 sm:$0xff]   ;;  %v4088_v24 = vld [vmem:[#allocation4 + $0x70] ss:$24 sps:$4 sm:$0xff]  }
 0x178   :  { %v4093_v43 = vld [vmem:[#allocation4 + $0xa4] ss:$24 sps:$4 sm:$0xff]   ;;  %v4091_v5 = vld [vmem:[#allocation4 + $0xa0] ss:$24 sps:$4 sm:$0xff]   ;;  %v4096_v25 = vld [vmem:[#allocation4 + $0xd4] ss:$24 sps:$4 sm:$0xff]  }
 0x179   :  { %2015 = vmatpush1.bf16.msra.mxu0 %v4028_v16  ;;  %2121 = vmatpush1.bf16.msra.mxu1 %v4031_v31  ;;  %v4094_v38 = vld [vmem:[#allocation4 + $0xd0] ss:$24 sps:$4 sm:$0xff]   ;;  %v4099_v36 = vld [vmem:[#allocation4 + $0x104] ss:$24 sps:$4 sm:$0xff]   ;;  %v4097_v11 = vld [vmem:[#allocation4 + $0x100] ss:$24 sps:$4 sm:$0xff]  }
 0x17a   :  { %2016 = vmatprep.subr.bf16.mxu0 %v4036_v6  ;;  %2122 = vmatprep.subr.bf16.mxu1 %v4039_v52  ;;  %v4102_v30 = vld [vmem:[#allocation4 + $0x134] ss:$24 sps:$4 sm:$0xff]   ;;  %v4100_v41 = vld [vmem:[#allocation4 + $0x130] ss:$24 sps:$4 sm:$0xff]   ;;  %v4105_v16 = vld [vmem:[#allocation4 + $0x164] ss:$24 sps:$4 sm:$0xff]  }
 0x17b   :  { %v4103_v31 = vld [vmem:[#allocation4 + $0x160] ss:$24 sps:$4 sm:$0xff]   ;;  %v4106_v6 = vld [vmem:[#allocation4 + $0x190] ss:$24 sps:$4 sm:$0xff]   ;;  %v4111_v52 = vld [vmem:[#allocation4 + $0x1c4] ss:$24 sps:$4 sm:$0xff]  }
 0x17d   :  { %2017 = vmatpush1.bf16.msra.mxu0 %v4034_v37  ;;  %2123 = vmatpush1.bf16.msra.mxu1 %v4037_v39  ;;  %v4109_v37 = vld [vmem:[#allocation4 + $0x1c0] ss:$24 sps:$4 sm:$0xff]   ;;  %v4114_v39 = vld [vmem:[#allocation4 + $0x1f4] ss:$24 sps:$4 sm:$0xff]  }
 0x17e   :  { %2018 = vmatprep.subr.bf16.mxu0 %v4042_v40  ;;  %2124 = vmatprep.subr.bf16.mxu1 %v4045_v42  ;;  %v4112_v40 = vld [vmem:[#allocation4 + $0x1f0] ss:$24 sps:$4 sm:$0xff]   ;;  %v4117_v42 = vld [vmem:[#allocation4 + $0x224] ss:$24 sps:$4 sm:$0xff]  }
 0x181   :  { %2019 = vmatpush1.bf16.msra.mxu0 %v4040_v45  ;;  %2125 = vmatpush1.bf16.msra.mxu1 %v4043_v22  ;;  %v4115_v45 = vld [vmem:[#allocation4 + $0x220] ss:$24 sps:$4 sm:$0xff]   ;;  %v4120_v22 = vld [vmem:[#allocation4 + $0x254] ss:$24 sps:$4 sm:$0xff]  }
 0x182   :  { %2020 = vmatprep.subr.bf16.mxu0 %v4048_v50  ;;  %2126 = vmatprep.subr.bf16.mxu1 %v4051_v56  ;;  %v4118_v50 = vld [vmem:[#allocation4 + $0x250] ss:$24 sps:$4 sm:$0xff]   ;;  %v4123_v56 = vld [vmem:[#allocation4 + $0x284] ss:$24 sps:$4 sm:$0xff]  }
 0x185   :  { %2021 = vmatpush1.bf16.msra.mxu0 %v4046_v20  ;;  %2127 = vmatpush1.bf16.msra.mxu1 %v4049_v46  ;;  %v4121_v20 = vld [vmem:[#allocation4 + $0x280] ss:$24 sps:$4 sm:$0xff]   ;;  %v4126_v46 = vld [vmem:[#allocation4 + $0x2b4] ss:$24 sps:$4 sm:$0xff]  }
 0x186   :  { %2022 = vmatprep.subr.bf16.mxu0 %v4054_v60  ;;  %2128 = vmatprep.subr.bf16.mxu1 %v4057_v47  ;;  %v4124_v60 = vld [vmem:[#allocation4 + $0x2b0] ss:$24 sps:$4 sm:$0xff]   ;;  %v4129_v47 = vld [vmem:[#allocation4 + $0x2e4] ss:$24 sps:$4 sm:$0xff]  }
 0x189   :  { %2023 = vmatpush1.bf16.msra.mxu0 %v4052_v48  ;;  %2129 = vmatpush1.bf16.msra.mxu1 %v4055_v55  ;;  %v4127_v48 = vld [vmem:[#allocation4 + $0x2e0] ss:$24 sps:$4 sm:$0xff]   ;;  %v4132_v55 = vld [vmem:[#allocation4 + $0x314] ss:$24 sps:$4 sm:$0xff]  }
 0x18a   :  { %2024 = vmatprep.subr.bf16.mxu0 %v4060_v57  ;;  %2130 = vmatprep.subr.bf16.mxu1 %v4063_v32  ;;  %v4130_v57 = vld [vmem:[#allocation4 + $0x310] ss:$24 sps:$4 sm:$0xff]   ;;  %v4135_v32 = vld [vmem:[#allocation4 + $0x344] ss:$24 sps:$4 sm:$0xff]  }
 0x18d   :  { %2025 = vmatpush1.bf16.msra.mxu0 %v4058_v63  ;;  %2131 = vmatpush1.bf16.msra.mxu1 %v4061_v61  ;;  %v4133_v63 = vld [vmem:[#allocation4 + $0x340] ss:$24 sps:$4 sm:$0xff]   ;;  %v4138_v61 = vld [vmem:[#allocation4 + $0x374] ss:$24 sps:$4 sm:$0xff]  }
 0x18e   :  { %2026 = vmatprep.subr.bf16.mxu0 %v4066_v62  ;;  %2132 = vmatprep.subr.bf16.mxu1 %v4069_v4  ;;  %v4136_v62 = vld [vmem:[#allocation4 + $0x370] ss:$24 sps:$4 sm:$0xff]   ;;  %v4141_v4 = vld [vmem:[#allocation4 + $0x3a4] ss:$24 sps:$4 sm:$0xff]  }
 0x191   :  { %2027 = vmatpush1.bf16.msra.mxu0 %v4064_v53  ;;  %2133 = vmatpush1.bf16.msra.mxu1 %v4067_v8  ;;  %v4139_v53 = vld [vmem:[#allocation4 + $0x3a0] ss:$24 sps:$4 sm:$0xff]   ;;  %v4144_v8 = vld [vmem:[#allocation4 + $0x3d4] ss:$24 sps:$4 sm:$0xff]  }
 0x192   :  { %2028 = vmatprep.subr.bf16.mxu0 %v4072_v7  ;;  %2134 = vmatprep.subr.bf16.mxu1 %v4075_v2  ;;  %v4145_v7 = vld [vmem:[#allocation4 + $0x400] ss:$24 sps:$4 sm:$0xff]   ;;  %v4150_v2 = vld [vmem:[#allocation4 + $0x434] ss:$24 sps:$4 sm:$0xff]  }
 0x195   :  { %2029 = vmatpush1.bf16.msra.mxu0 %v4070_v9  ;;  %2135 = vmatpush1.bf16.msra.mxu1 %v4073_v10  ;;  %v4148_v9 = vld [vmem:[#allocation4 + $0x430] ss:$24 sps:$4 sm:$0xff]   ;;  %v4153_v10 = vld [vmem:[#allocation4 + $0x464] ss:$24 sps:$4 sm:$0xff]  }
 0x196   :  { %2030 = vmatprep.subr.bf16.mxu0 %v4078_v27  ;;  %2136 = vmatprep.subr.bf16.mxu1 %v4081_v54  ;;  %v4156_v27 = vld [vmem:[#allocation4 + $0x494] ss:$24 sps:$4 sm:$0xff]   ;;  %v4159_v54 = vld [vmem:[#allocation4 + $0x4c4] ss:$24 sps:$4 sm:$0xff]  }
 0x199   :  { %2031 = vmatpush1.bf16.msra.mxu0 %v4076_v13  ;;  %2137 = vmatpush1.bf16.msra.mxu1 %v4079_v1  ;;  %v4157_v13 = vld [vmem:[#allocation4 + $0x4c0] ss:$24 sps:$4 sm:$0xff]   ;;  %v4162_v1 = vld [vmem:[#allocation4 + $0x4f4] ss:$24 sps:$4 sm:$0xff]  }
 0x19a   :  { %2159 = vmatprep.subr.bf16.mxu0 %v4084_v26  ;;  %v4178_v26 = vld [vmem:[#allocation6] ss:$12 sps:$4 sm:$0xff]  }
 0x19c   :  { %2033 = vmatmul.mubr.bf16.vlgmr.msra.gmra.mrb[24].mxu0 %v4846_v58  ;;  %2139 = vmatmul.mubr.bf16.vlgmr.msra.gmra.mrb[24].mxu1 %v4846_v58 }
 0x19d   :  { %2042 = vmatprep.mubr.bf16.mxu0 %v4876_v3  ;;  %2148 = vmatprep.mubr.bf16.mxu1 %v4876_v3 }
 0x19e   :  { %2160 = vmatpush1.bf16.msra.mxu0 %v4082_v15  ;;  %v4180_v15 = vld [vmem:[#allocation6 + $0x4] ss:$12 sps:$4 sm:$0xff]  }
 0x19f   :  { %2161 = vmatprep.subr.bf16.mxu0 %v4087_v34  ;;  %v4183_v34 = vld [vmem:[#allocation6 + $0x1c] ss:$12 sps:$4 sm:$0xff]   ;;  %2705 = vmatprep.subr.bf16.mxu1 %v4180_v15 }
 0x1a0   :  { %2706 = vmatpush1.bf16.msra.mxu1 %v4178_v26 }
 0x1a1   :  { %2707 = vmatprep.subr.bf16.mxu1 %v4183_v34  ;;  %v4211_v34 = vld [vmem:[#allocation6 + $0x108] ss:$12 sps:$4 sm:$0xff]  }
 0x1a2   :  { %2162 = vmatpush1.bf16.msra.mxu0 %v4085_v14  ;;  %v4160_v14 = vld [vmem:[#allocation4 + $0x4f0] ss:$24 sps:$4 sm:$0xff]  }
 0x1a3   :  { %2163 = vmatprep.subr.bf16.mxu0 %v4090_v18  ;;  %v4181_v18 = vld [vmem:[#allocation6 + $0x18] ss:$12 sps:$4 sm:$0xff]  }
 0x1a4   :  { %2043 = vmatmul.mubr.bf16.gmra.mrb[28].mxu0 %v4881_v35  ;;  %2149 = vmatmul.mubr.bf16.gmra.mrb[28].mxu1 %v4881_v35 }
 0x1a5   :  { %2191 = vmatprep.mubr.bf16.mxu0 %v4768_v12  ;;  %v4108_v12 = vld [vmem:[#allocation4 + $0x194] ss:$24 sps:$4 sm:$0xff]   ;;  %2708 = vmatpush1.bf16.msra.mxu1 %v4181_v18 }
 0x1a6   :  { %2164 = vmatpush1.bf16.msra.mxu0 %v4088_v24  ;;  %v4165_v24 = vld [vmem:[#allocation4 + $0x524] ss:$24 sps:$4 sm:$0xff]  }
 0x1a7   :  { %2165 = vmatprep.subr.bf16.mxu0 %v4093_v43  ;;  %v4186_v43 = vld [vmem:[#allocation6 + $0x34] ss:$12 sps:$4 sm:$0xff]  }
 0x1a8   :  { %2709 = vmatprep.subr.bf16.mxu1 %v4186_v43 }
 0x1aa   :  { %2166 = vmatpush1.bf16.msra.mxu0 %v4091_v5  ;;  %v4163_v5 = vld [vmem:[#allocation4 + $0x520] ss:$24 sps:$4 sm:$0xff]  }
 0x1ab   :  { %2167 = vmatprep.subr.bf16.mxu0 %v4096_v25  ;;  %v4184_v25 = vld [vmem:[#allocation6 + $0x30] ss:$12 sps:$4 sm:$0xff]  }
 0x1ac   :  { %2710 = vmatpush1.bf16.msra.mxu1 %v4184_v25 }
 0x1ae   :  { %2168 = vmatpush1.bf16.msra.mxu0 %v4094_v38  ;;  %v4168_v38 = vld [vmem:[#allocation4 + $0x554] ss:$24 sps:$4 sm:$0xff]  }
 0x1af   :  { %2169 = vmatprep.subr.bf16.mxu0 %v4099_v36  ;;  %v4189_v36 = vld [vmem:[#allocation6 + $0x4c] ss:$12 sps:$4 sm:$0xff]  }
 0x1b0   :  { %2711 = vmatprep.subr.bf16.mxu1 %v4189_v36 }
 0x1b2   :  { %2170 = vmatpush1.bf16.msra.mxu0 %v4097_v11  ;;  %v4166_v11 = vld [vmem:[#allocation4 + $0x550] ss:$24 sps:$4 sm:$0xff]  }
 0x1b3   :  { %2171 = vmatprep.subr.bf16.mxu0 %v4102_v30  ;;  %v4187_v30 = vld [vmem:[#allocation6 + $0x48] ss:$12 sps:$4 sm:$0xff]  }
 0x1b4   :  { %2712 = vmatpush1.bf16.msra.mxu1 %v4187_v30 }
 0x1b6   :  { %2172 = vmatpush1.bf16.msra.mxu0 %v4100_v41  ;;  %v4171_v41 = vld [vmem:[#allocation4 + $0x584] ss:$24 sps:$4 sm:$0xff]  }
 0x1b7   :  { %2173 = vmatprep.subr.bf16.mxu0 %v4105_v16  ;;  %v4192_v16 = vld [vmem:[#allocation6 + $0x64] ss:$12 sps:$4 sm:$0xff]  }
 0x1b8   :  { %2713 = vmatprep.subr.bf16.mxu1 %v4192_v16 }
 0x1ba   :  { %2174 = vmatpush1.bf16.msra.mxu0 %v4103_v31  ;;  %v4169_v31 = vld [vmem:[#allocation4 + $0x580] ss:$24 sps:$4 sm:$0xff]  }
 0x1bb   :  { %2175 = vmatprep.subr.bf16.mxu0 %v4108_v12  ;;  %v4190_v12 = vld [vmem:[#allocation6 + $0x60] ss:$12 sps:$4 sm:$0xff]  }
 0x1bc   :  { %2714 = vmatpush1.bf16.msra.mxu1 %v4190_v12 }
 0x1be   :  { %2176 = vmatpush1.bf16.msra.mxu0 %v4106_v6  ;;  %v4174_v6 = vld [vmem:[#allocation4 + $0x5b4] ss:$24 sps:$4 sm:$0xff]  }
 0x1bf   :  { %2177 = vmatprep.subr.bf16.mxu0 %v4111_v52  ;;  %v4195_v52 = vld [vmem:[#allocation6 + $0x7c] ss:$12 sps:$4 sm:$0xff]  }
 0x1c0   :  { %2715 = vmatprep.subr.bf16.mxu1 %v4195_v52  ;;  %v4214_v52 = vld [vmem:[#allocation6 + $0x120] ss:$12 sps:$4 sm:$0xff]  }
 0x1c2   :  { %2178 = vmatpush1.bf16.msra.mxu0 %v4109_v37  ;;  %v4172_v37 = vld [vmem:[#allocation4 + $0x5b0] ss:$24 sps:$4 sm:$0xff]  }
 0x1c3   :  { %2179 = vmatprep.subr.bf16.mxu0 %v4114_v39  ;;  %v4193_v39 = vld [vmem:[#allocation6 + $0x78] ss:$12 sps:$4 sm:$0xff]  }
 0x1c4   :  { %2716 = vmatpush1.bf16.msra.mxu1 %v4193_v39 }
 0x1c6   :  { %2180 = vmatpush1.bf16.msra.mxu0 %v4112_v40  ;;  %v4177_v40 = vld [vmem:[#allocation4 + $0x5e4] ss:$24 sps:$4 sm:$0xff]  }
 0x1c7   :  { %2181 = vmatprep.subr.bf16.mxu0 %v4117_v42  ;;  %v4198_v42 = vld [vmem:[#allocation6 + $0x94] ss:$12 sps:$4 sm:$0xff]  }
 0x1c8   :  { %2717 = vmatprep.subr.bf16.mxu1 %v4198_v42 }
 0x1ca   :  { %2182 = vmatpush1.bf16.msra.mxu0 %v4115_v45  ;;  %v4175_v45 = vld [vmem:[#allocation4 + $0x5e0] ss:$24 sps:$4 sm:$0xff]  }
 0x1cb   :  { %2183 = vmatprep.subr.bf16.mxu0 %v4120_v22  ;;  %v4196_v22 = vld [vmem:[#allocation6 + $0x90] ss:$12 sps:$4 sm:$0xff]  }
 0x1cc   :  { %2718 = vmatpush1.bf16.msra.mxu1 %v4196_v22 }
 0x1ce   :  { %2184 = vmatpush1.bf16.msra.mxu0 %v4118_v50  ;;  %v4201_v50 = vld [vmem:[#allocation6 + $0xac] ss:$12 sps:$4 sm:$0xff]  }
 0x1cf   :  { %2185 = vmatprep.subr.bf16.mxu0 %v4123_v56  ;;  %v4199_v56 = vld [vmem:[#allocation6 + $0xa8] ss:$12 sps:$4 sm:$0xff]   ;;  %2719 = vmatprep.subr.bf16.mxu1 %v4201_v50 }
 0x1d0   :  { %2720 = vmatpush1.bf16.msra.mxu1 %v4199_v56  ;;  %v4219_v50 = vld [vmem:[#allocation6 + $0x13c] ss:$12 sps:$4 sm:$0xff]   ;;  %v4217_v56 = vld [vmem:[#allocation6 + $0x138] ss:$12 sps:$4 sm:$0xff]  }
 0x1d2   :  { %2186 = vmatpush1.bf16.msra.mxu0 %v4121_v20  ;;  %v4204_v20 = vld [vmem:[#allocation6 + $0xc4] ss:$12 sps:$4 sm:$0xff]  }
 0x1d3   :  { %2187 = vmatprep.subr.bf16.mxu0 %v4126_v46  ;;  %v4202_v46 = vld [vmem:[#allocation6 + $0xc0] ss:$12 sps:$4 sm:$0xff]   ;;  %2721 = vmatprep.subr.bf16.mxu1 %v4204_v20 }
 0x1d4   :  { %2722 = vmatpush1.bf16.msra.mxu1 %v4202_v46  ;;  %v4222_v20 = vld [vmem:[#allocation6 + $0x154] ss:$12 sps:$4 sm:$0xff]   ;;  %v4220_v46 = vld [vmem:[#allocation6 + $0x150] ss:$12 sps:$4 sm:$0xff]  }
 0x1d6   :  { %2188 = vmatpush1.bf16.msra.mxu0 %v4124_v60  ;;  %v4207_v60 = vld [vmem:[#allocation6 + $0xdc] ss:$12 sps:$4 sm:$0xff]  }
 0x1d7   :  { %2189 = vmatprep.subr.bf16.mxu0 %v4129_v47  ;;  %v4205_v47 = vld [vmem:[#allocation6 + $0xd8] ss:$12 sps:$4 sm:$0xff]   ;;  %2723 = vmatprep.subr.bf16.mxu1 %v4207_v60 }
 0x1d8   :  { %2724 = vmatpush1.bf16.msra.mxu1 %v4205_v47  ;;  %v4225_v60 = vld [vmem:[#allocation6 + $0x16c] ss:$12 sps:$4 sm:$0xff]   ;;  %v4223_v47 = vld [vmem:[#allocation6 + $0x168] ss:$12 sps:$4 sm:$0xff]  }
 0x1da   :  { %2190 = vmatpush1.bf16.msra.mxu0 %v4127_v48 }
 0x1db   :  { %2212 = vmatprep.subr.bf16.mxu0 %v4132_v55 }
 0x1dd   :  { %2192 = vmatmul.mubr.bf16.vlgmr.msra.gmra.mrb[32].mxu0 %v4762_v44  ;;  %v4142_v44 = vld [vmem:[#allocation4 + $0x3d0] ss:$24 sps:$4 sm:$0xff]  }
 0x1de   :  { %2201 = vmatprep.mubr.bf16.mxu0 %v4789_v33  ;;  %2213 = vmatpush1.bf16.msra.mxu0 %v4130_v57  ;;  %v4147_v33 = vld [vmem:[#allocation4 + $0x404] ss:$24 sps:$4 sm:$0xff]  }
 0x1df   :  { %2214 = vmatprep.subr.bf16.mxu0 %v4135_v32 }
 0x1e2   :  { %2215 = vmatpush1.bf16.msra.mxu0 %v4133_v63 }
 0x1e3   :  { %2216 = vmatprep.subr.bf16.mxu0 %v4138_v61 }
 0x1e5   :  { %2202 = vmatmul.mubr.bf16.gmra.mrb[36].mxu0 %v4839_v28  ;;  %v4151_v28 = vld [vmem:[#allocation4 + $0x460] ss:$24 sps:$4 sm:$0xff]  }
 0x1e6   :  { %2217 = vmatpush1.bf16.msra.mxu0 %v4136_v62  ;;  %2244 = vmatprep.mubr.bf16.mxu0 %v4862_v29  ;;  %v4154_v29 = vld [vmem:[#allocation4 + $0x490] ss:$24 sps:$4 sm:$0xff]  }
 0x1e7   :  { %2218 = vmatprep.subr.bf16.mxu0 %v4141_v4  ;;  %v4208_v62 = vld [vmem:[#allocation6 + $0xf0] ss:$12 sps:$4 sm:$0xff]  }
 0x1ea   :  { %2219 = vmatpush1.bf16.msra.mxu0 %v4139_v53 }
 0x1eb   :  { %2220 = vmatprep.subr.bf16.mxu0 %v4144_v8  ;;  %v4210_v8 = vld [vmem:[#allocation6 + $0xf4] ss:$12 sps:$4 sm:$0xff]  }
 0x1ec   :  { %2725 = vmatprep.subr.bf16.mxu1 %v4210_v8 }
 0x1ed   :  { %2726 = vmatpush1.bf16.msra.mxu1 %v4208_v62 }
 0x1ee   :  { %2221 = vmatpush1.bf16.msra.mxu0 %v4142_v44 }
 0x1ef   :  { %2222 = vmatprep.subr.bf16.mxu0 %v4147_v33 }
 0x1f2   :  { %2223 = vmatpush1.bf16.msra.mxu0 %v4145_v7 }
 0x1f3   :  { %2224 = vmatprep.subr.bf16.mxu0 %v4150_v2 }
 0x1f6   :  { %2225 = vmatpush1.bf16.msra.mxu0 %v4148_v9 }
 0x1f7   :  { %2226 = vmatprep.subr.bf16.mxu0 %v4153_v10 }
 0x1fa   :  { %2227 = vmatpush1.bf16.msra.mxu0 %v4151_v28 }
 0x1fb   :  { %2228 = vmatprep.subr.bf16.mxu0 %v4156_v27 }
 0x1fe   :  { %2229 = vmatpush1.bf16.msra.mxu0 %v4154_v29 }
 0x1ff   :  { %2230 = vmatprep.subr.bf16.mxu0 %v4159_v54 }
 0x202   :  { %2231 = vmatpush1.bf16.msra.mxu0 %v4157_v13  ;;  %v4213_v13 = vld [vmem:[#allocation6 + $0x10c] ss:$12 sps:$4 sm:$0xff]  }
 0x203   :  { %2232 = vmatprep.subr.bf16.mxu0 %v4162_v1  ;;  %2727 = vmatprep.subr.bf16.mxu1 %v4213_v13 }
 0x204   :  { %2728 = vmatpush1.bf16.msra.mxu1 %v4211_v34 }
 0x206   :  { %2233 = vmatpush1.bf16.msra.mxu0 %v4160_v14 }
 0x207   :  { %2234 = vmatprep.subr.bf16.mxu0 %v4165_v24 }
 0x20a   :  { %2235 = vmatpush1.bf16.msra.mxu0 %v4163_v5 }
 0x20b   :  { %2236 = vmatprep.subr.bf16.mxu0 %v4168_v38 }
 0x20e   :  { %2237 = vmatpush1.bf16.msra.mxu0 %v4166_v11 }
 0x20f   :  { %2238 = vmatprep.subr.bf16.mxu0 %v4171_v41  ;;  %v4216_v41 = vld [vmem:[#allocation6 + $0x124] ss:$12 sps:$4 sm:$0xff]  }
 0x210   :  { %2729 = vmatprep.subr.bf16.mxu1 %v4216_v41 }
 0x211   :  { %2730 = vmatpush1.bf16.msra.mxu1 %v4214_v52 }
 0x212   :  { %2239 = vmatpush1.bf16.msra.mxu0 %v4169_v31  ;;  %2731 = vmatprep.subr.bf16.mxu1 %v4219_v50 }
 0x213   :  { %2240 = vmatprep.subr.bf16.mxu0 %v4174_v6 }
 0x215   :  { %2732 = vmatpush1.bf16.msra.mxu1 %v4217_v56 }
 0x216   :  { %2241 = vmatpush1.bf16.msra.mxu0 %v4172_v37  ;;  %2733 = vmatprep.subr.bf16.mxu1 %v4222_v20 }
 0x217   :  { %2242 = vmatprep.subr.bf16.mxu0 %v4177_v40 }
 0x219   :  { %2734 = vmatpush1.bf16.msra.mxu1 %v4220_v46 }
 0x21a   :  { %2243 = vmatpush1.bf16.msra.mxu0 %v4175_v45  ;;  %2735 = vmatprep.subr.bf16.mxu1 %v4225_v60 }
 0x21d   :  { %2245 = vmatmul.mubr.bf16.vlgmr.msra.gmra.mrb[32].mxu0 %v4846_v58  ;;  %2736 = vmatpush1.bf16.msra.mxu1 %v4223_v47 }
 0x21e   :  { %2254 = vmatprep.mubr.bf16.mxu0 %v4876_v3 }
 0x225   :  { %2255 = vmatmul.mubr.bf16.gmra.mrb[36].mxu0 %v4881_v35 }
 0x26f   :  { %v2034_v48 = vpop.f32.mrb[24].mxu0  ;;  %v2140_v55 = vpop.f32.mrb[24].mxu1 }
 0x270   :  { %v2036_v57 = vpop.f32.mrb[25].mxu0  ;;  %v2142_v32 = vpop.f32.mrb[25].mxu1  ;;  %v2265_v58 = vrot.slane %v2034_v48, 7  ;;  %v4226_v48 = vld [vmem:[#allocation6 + $0xc8] ss:$12 sps:$4 sm:$0xff]  }
 0x271   :  { %v2038_v63 = vpop.f32.mrb[26].mxu0  ;;  %v2144_v61 = vpop.f32.mrb[26].mxu1  ;;  %v2266_v44 = vrot.slane %v2036_v57, 7  ;;  %3744 = vmatprep.subr.bf16.mxu1 %v4226_v48 }
 0x272   :  { %v2267_v4 = vrot.slane %v2038_v63, 7  ;;  %v2040_v3 = vpop.f32.mrb[27].mxu0  ;;  %v2146_v53 = vpop.f32.mrb[27].mxu1 }
 0x273   :  { %v2268_v33 = vrot.slane %v2040_v3, 7 }
 0x274   :  { %v2277_v7 = vsel %vm571_vm1, %v2265_v58, %v2267_v4 }
 0x275   :  { %v4899_v35 = vadd.f32 %v2277_v7, %v2144_v61  ;;  %v2278_v2 = vsel %vm571_vm1, %v2266_v44, %v2268_v33 }
 0x276   :  { %v4903_v9 = vadd.f32 %v2278_v2, %v2146_v53 }
 0x277   :  { %v2044_v10 = vpop.f32.mrb[28].mxu0  ;;  %v2150_v28 = vpop.f32.mrb[28].mxu1 }
 0x278   :  { %v2269_v27 = vrot.slane %v2044_v10, 7  ;;  %v2046_v29 = vpop.f32.mrb[29].mxu0  ;;  %v2152_v54 = vpop.f32.mrb[29].mxu1 }
 0x279   :  { %v2270_v1 = vrot.slane %v2046_v29, 7  ;;  %v2048_v26 = vpop.f32.mrb[30].mxu0  ;;  %v2154_v15 = vpop.f32.mrb[30].mxu1 }
 0x27a   :  { %v2275_v14 = vsel %vm571_vm1, %v2267_v4, %v2269_v27  ;;  %v2271_v18 = vrot.slane %v2048_v26, 7  ;;  %v2050_v24 = vpop.f32.mrb[31].mxu0  ;;  %v2156_v43 = vpop.f32.mrb[31].mxu1 }
 0x27b   :  { %v2285_v5 = vmul.f32 %v4599_v17, %v2275_v14  ;;  %v2276_v25 = vsel %vm571_vm1, %v2268_v33, %v2270_v1  ;;  %v2272_v38 = vrot.slane %v2050_v24, 7 }
 0x27c   :  { %v2286_v36 = vmul.f32 %v4599_v17, %v2276_v25  ;;  %v2279_v11 = vsel %vm571_vm1, %v2271_v18, %v2265_v58  ;;  %v2273_v30 = vsel %vm571_vm1, %v2269_v27, %v2271_v18 }
 0x27d   :  { %v4915_v16 = vadd.f32 %v2285_v5, %v2150_v28  ;;  %v2281_v31 = vmul.f32 %v4567_v51, %v2279_v11  ;;  %v4918_v12 = vadd.f32 %v2273_v30, %v2154_v15  ;;  %v2280_v6 = vsel %vm571_vm1, %v2272_v38, %v2266_v44 }
 0x27e   :  { %v4922_v37 = vadd.f32 %v2286_v36, %v2152_v54  ;;  %v2282_v39 = vmul.f32 %v4567_v51, %v2280_v6  ;;  %v2274_v40 = vsel %vm571_vm1, %v2270_v1, %v2272_v38 }
 0x27f   :  { %v4927_v42 = vadd.f32 %v2274_v40, %v2156_v43  ;;  %v2289_v45 = vadd.f32 %v2281_v31, %v2140_v55  ;;  %v2329_v55 = vld [vmem:[%s5129_s7] sm:$0x3] }
 0x280   :  { %v2290_v22 = vadd.f32 %v2282_v39, %v2142_v32  ;;  %v2334_v3 = vrot.slane %v2329_v55, %v689_v49  ;;  %v2338_v44 = vrot.slane %v2329_v55, %v693_v59 }
 0x2f0   :  { %v2246_v57 = vpop.f32.mrb[32].mxu0 }
 0x2f1   :  { %v2248_v63 = vpop.f32.mrb[33].mxu0  ;;  %v2297_v61 = vrot.slane %v2246_v57, 1  ;;  %v4227_v57 = vld [vmem:[#allocation6 + $0x8] ss:$12 sps:$4 sm:$0xff]  }
 0x2f2   :  { %v2250_v32 = vpop.f32.mrb[34].mxu0  ;;  %v2298_v4 = vrot.slane %v2248_v63, 1 }
 0x2f3   :  { %v2299_v62 = vrot.slane %v2250_v32, 1  ;;  %v2252_v58 = vpop.f32.mrb[35].mxu0 }
 0x2f4   :  { %v2300_v53 = vrot.slane %v2252_v58, 1 }
 0x2f5   :  { %v2309_v8 = vsel %vm636_vm9, %v2297_v61, %v2299_v62 }
 0x2f6   :  { %v2321_v33 = vadd.f32 %v2309_v8, %v2289_v45  ;;  %v2310_v7 = vsel %vm636_vm9, %v2298_v4, %v2300_v53 }
 0x2f7   :  { %v2322_v2 = vadd.f32 %v2310_v7, %v2290_v22  ;;  %v4231_v7 = vld [vmem:[#allocation6 + $0x38] ss:$12 sps:$4 sm:$0xff]  }
 0x2f8   :  { %v2341_v10 = vadd.f32 %v2334_v3, %v2321_v33  ;;  %v2256_v28 = vpop.f32.mrb[36].mxu0  ;;  %v4230_v33 = vld [vmem:[#allocation6 + $0xf8] ss:$12 sps:$4 sm:$0xff]  }
 0x2f9   :  { %v2342_v27 = vadd.f32 %v2338_v44, %v2322_v2  ;;  %v2301_v29 = vrot.slane %v2256_v28, 1  ;;  %v2258_v54 = vpop.f32.mrb[37].mxu0  ;;  %v4232_v2 = vld [vmem:[#allocation6 + $0x110] ss:$12 sps:$4 sm:$0xff]   ;;  %v4234_v28 = vld [vmem:[#allocation6 + $0x128] ss:$12 sps:$4 sm:$0xff]  }
 0x2fa   :  { %vm2349_vm14 = vcmp.ge.f32.partialorder %v2341_v10, 0.0  ;;  %v2357_v13 = vmul.f32 0.1, %v2341_v10  ;;  %v2302_v49 = vrot.slane %v2258_v54, 1  ;;  %v2260_v1 = vpop.f32.mrb[38].mxu0 }
 0x2fb   :  { %v2307_v26 = vsel %vm636_vm9, %v2299_v62, %v2301_v29  ;;  %v2303_v15 = vrot.slane %v2260_v1, 1  ;;  %v2262_v34 = vpop.f32.mrb[39].mxu0  ;;  %vm2350_vm15 = vcmp.ge.f32.partialorder %v2342_v27, 0.0  ;;  %v2358_v59 = vmul.f32 0.1, %v2342_v27 }
 0x2fc   :  { %v2365_v14 = vsel %vm2349_vm14, %v2341_v10, %v2357_v13  ;;  %v2315_v18 = vmul.f32 %v4677_v19, %v2307_v26  ;;  %v2308_v24 = vsel %vm636_vm9, %v2300_v53, %v2302_v49  ;;  %v2304_v43 = vrot.slane %v2262_v34, 1  ;;  %v4228_v62 = vld [vmem:[#allocation6 + $0xe0] ss:$12 sps:$4 sm:$0xff]   ;;  %v4233_v10 = vld [vmem:[#allocation6 + $0x50] ss:$12 sps:$4 sm:$0xff]  }
 0x2fd   :  { %2373 = vst [vmem:[%s5134_s12] sm:$0xff] %v2365_v14  ;;  %v2316_v5 = vmul.f32 %v4677_v19, %v2308_v24  ;;  %v2305_v25 = vsel %vm636_vm9, %v2301_v29, %v2303_v15  ;;  %v2311_v38 = vsel %vm636_vm9, %v2303_v15, %v2297_v61  ;;  %v2366_v36 = vsel %vm2350_vm15, %v2342_v27, %v2358_v59  ;;  %v4235_v27 = vld [vmem:[#allocation6 + $0x68] ss:$12 sps:$4 sm:$0xff]   ;;  %v4236_v29 = vld [vmem:[#allocation6 + $0x140] ss:$12 sps:$4 sm:$0xff]   ;;  %v4238_v13 = vld [vmem:[#allocation6 + $0x158] ss:$12 sps:$4 sm:$0xff]  }
 0x2fe   :  { %v2323_v11 = vadd.f32 %v2315_v18, %v4899_v35  ;;  %v2319_v30 = vmul.f32 %v4680_v21, %v2311_v38  ;;  %v2325_v41 = vadd.f32 %v2305_v25, %v4915_v16  ;;  %v2306_v31 = vsel %vm636_vm9, %v2302_v49, %v2304_v43  ;;  %2374 = vst [vmem:[%s5134_s12 + $0x8] sm:$0xff] %v2366_v36  ;;  %v4237_v54 = vld [vmem:[#allocation6 + $0x80] ss:$12 sps:$4 sm:$0xff]   ;;  %v4239_v49 = vld [vmem:[#allocation6 + $0x98] ss:$12 sps:$4 sm:$0xff]  }
 0x2ff   :  { %v2324_v6 = vadd.f32 %v2316_v5, %v4903_v9  ;;  %v2312_v52 = vsel %vm636_vm9, %v2304_v43, %v2298_v4  ;;  %v2326_v39 = vadd.f32 %v2306_v31, %v4922_v37  ;;  %v4240_v1 = vld [vmem:[#allocation6 + $0x170] ss:$12 sps:$4 sm:$0xff]   ;;  %v4242_v15 = vld [vmem:[#allocation7] ss:$12 sps:$4 sm:$0xff]   ;;  %v4245_v59 = vld [vmem:[#allocation7 + $0x8] ss:$12 sps:$4 sm:$0xff]  }
 0x300   :  { %v2343_v40 = vadd.f32 %v2334_v3, %v2323_v11  ;;  %v2327_v35 = vadd.f32 %v2319_v30, %v4918_v12  ;;  %v2345_v45 = vadd.f32 %v2334_v3, %v2325_v41  ;;  %v2320_v16 = vmul.f32 %v4680_v21, %v2312_v52  ;;  %v4241_v26 = vld [vmem:[#allocation6 + $0xb0] ss:$12 sps:$4 sm:$0xff]   ;;  %3792 = vmatprep.subr.bf16.mxu0 %v4245_v59  ;;  %v4246_v18 = vld [vmem:[#allocation7 + $0x18] ss:$12 sps:$4 sm:$0xff]   ;;  %v4249_v24 = vld [vmem:[#allocation7 + $0x20] ss:$12 sps:$4 sm:$0xff]  }
 0x301   :  { %v2346_v22 = vadd.f32 %v2338_v44, %v2326_v39  ;;  %v2344_v50 = vadd.f32 %v2338_v44, %v2324_v6  ;;  %v4244_v34 = vld [vmem:[#allocation7 + $0x4] ss:$12 sps:$4 sm:$0xff]   ;;  %3793 = vmatpush3.bf16.msra.mxu0 %v4245_v59  ;;  %v4252_v5 = vld [vmem:[#allocation7 + $0x34] ss:$12 sps:$4 sm:$0xff]   ;;  %v4256_v38 = vld [vmem:[#allocation7 + $0x4c] ss:$12 sps:$4 sm:$0xff]  }
 0x302   :  { %vm2351_vm0 = vcmp.ge.f32.partialorder %v2343_v40, 0.0  ;;  %v2359_v56 = vmul.f32 0.1, %v2343_v40  ;;  %v2328_v20 = vadd.f32 %v2320_v16, %v4927_v42  ;;  %v2347_v46 = vadd.f32 %v2334_v3, %v2327_v35  ;;  %3794 = vmatprep.subr.bf16.mxu0 %v4249_v24  ;;  %v4250_v43 = vld [vmem:[#allocation7 + $0x30] ss:$12 sps:$4 sm:$0xff]  }
 0x303   :  { %vm2352_vm2 = vcmp.ge.f32.partialorder %v2344_v50, 0.0  ;;  %v2360_v9 = vmul.f32 0.1, %v2344_v50  ;;  %vm2354_vm3 = vcmp.ge.f32.partialorder %v2346_v22, 0.0  ;;  %v2362_v60 = vmul.f32 0.1, %v2346_v22 }
 0x304   :  { %v2367_v47 = vsel %vm2351_vm0, %v2343_v40, %v2359_v56  ;;  %v2348_v48 = vadd.f32 %v2338_v44, %v2328_v20  ;;  %vm2353_vm4 = vcmp.ge.f32.partialorder %v2345_v45, 0.0  ;;  %vm2355_vm5 = vcmp.ge.f32.partialorder %v2347_v46, 0.0  ;;  %v4229_v44 = vld [vmem:[#allocation6 + $0x20] ss:$12 sps:$4 sm:$0xff]   ;;  %v4253_v25 = vld [vmem:[#allocation7 + $0x38] ss:$12 sps:$4 sm:$0xff]  }
 0x305   :  { %v2368_v37 = vsel %vm2352_vm2, %v2344_v50, %v2360_v9  ;;  %2375 = vst [vmem:[%s5134_s12 + $0x10] sm:$0xff] %v2367_v47  ;;  %v2381_v12 = vpack.c.bf16 %v2367_v47, %v2365_v14  ;;  %v2370_v63 = vsel %vm2354_vm3, %v2346_v22, %v2362_v60  ;;  %v2361_v55 = vmul.f32 0.1, %v2345_v45  ;;  %v4248_v14 = vld [vmem:[#allocation7 + $0x1c] ss:$12 sps:$4 sm:$0xff]   ;;  %3795 = vmatpush3.bf16.msra.mxu0 %v4249_v24  ;;  %v4991_v56 = vld [vmem:[%s5127_s5] sm:$0xff]  }
 0x306   :  { %2376 = vst [vmem:[%s5134_s12 + $0x18] sm:$0xff] %v2368_v37  ;;  %v2382_v42 = vpack.c.bf16 %v2368_v37, %v2366_v36  ;;  %vm2356_vm6 = vcmp.ge.f32.partialorder %v2348_v48, 0.0  ;;  %v2364_v32 = vmul.f32 0.1, %v2348_v48  ;;  %2378 = vst [vmem:[%s5134_s12 + $0x28] sm:$0xff] %v2370_v63  ;;  %3796 = vmatprep.subr.bf16.mxu0 %v4253_v25 }
 0x307   :  { %v2363_v61 = vmul.f32 0.1, %v2347_v46  ;;  %v2369_v58 = vsel %vm2353_vm4, %v2345_v45, %v2361_v55  ;;  %v4254_v36 = vld [vmem:[#allocation7 + $0x48] ss:$12 sps:$4 sm:$0xff]   ;;  %v4257_v11 = vld [vmem:[#allocation7 + $0x50] ss:$12 sps:$4 sm:$0xff]  }
 0x308   :  { %2737 = vmatprep.mubr.bf16.mxu1 %v2382_v42  ;;  %v2372_v4 = vsel %vm2356_vm6, %v2348_v48, %v2364_v32  ;;  %2377 = vst [vmem:[%s5134_s12 + $0x20] sm:$0xff] %v2369_v58  ;;  %v4260_v30 = vld [vmem:[#allocation7 + $0x64] ss:$12 sps:$4 sm:$0xff]   ;;  %v4258_v41 = vld [vmem:[#allocation7 + $0x60] ss:$12 sps:$4 sm:$0xff]  }
 0x309   :  { %v2371_v3 = vsel %vm2355_vm5, %v2347_v46, %v2363_v61  ;;  %2738 = vmatmul.mubr.bf16.vlgmr.msra.gmra.mrb[32].mxu1 %v2381_v12  ;;  %2380 = vst [vmem:[%s5134_s12 + $0x38] sm:$0xff] %v2372_v4  ;;  %v2384_v53 = vpack.c.bf16 %v2372_v4, %v2370_v63  ;;  %3797 = vmatpush3.bf16.msra.mxu0 %v4253_v25  ;;  %v4261_v31 = vld [vmem:[#allocation7 + $0x68] ss:$12 sps:$4 sm:$0xff]   ;;  %v4262_v52 = vld [vmem:[#allocation7 + $0x78] ss:$12 sps:$4 sm:$0xff]  }
 0x30a   :  { %2379 = vst [vmem:[%s5134_s12 + $0x30] sm:$0xff] %v2371_v3  ;;  %v2383_v8 = vpack.c.bf16 %v2371_v3, %v2369_v58  ;;  %3745 = vmatpush3.bf16.msra.mxu1 %v4227_v57  ;;  %3798 = vmatprep.subr.bf16.mxu0 %v4257_v11  ;;  %v4264_v6 = vld [vmem:[#allocation7 + $0x7c] ss:$12 sps:$4 sm:$0xff]   ;;  %v4265_v39 = vld [vmem:[#allocation7 + $0x80] ss:$12 sps:$4 sm:$0xff]  }
 0x30b   :  { %2747 = vmatprep.mubr.bf16.mxu1 %v2384_v53  ;;  %3746 = vmatprep.subr.bf16.mxu1 %v4228_v62  ;;  %v4268_v40 = vld [vmem:[#allocation7 + $0x94] ss:$12 sps:$4 sm:$0xff]   ;;  %v4266_v35 = vld [vmem:[#allocation7 + $0x90] ss:$12 sps:$4 sm:$0xff]   ;;  %v4269_v45 = vld [vmem:[#allocation7 + $0x98] ss:$12 sps:$4 sm:$0xff]  }
 0x30c   :  { %v4272_v16 = vld [vmem:[#allocation7 + $0xac] ss:$12 sps:$4 sm:$0xff]   ;;  %v4270_v22 = vld [vmem:[#allocation7 + $0xa8] ss:$12 sps:$4 sm:$0xff]   ;;  %v4273_v50 = vld [vmem:[#allocation7 + $0xb0] ss:$12 sps:$4 sm:$0xff]  }
 0x30d   :  { %3799 = vmatpush3.bf16.msra.mxu0 %v4257_v11 }
 0x30e   :  { %3747 = vmatpush3.bf16.msra.mxu1 %v4229_v44  ;;  %3800 = vmatprep.subr.bf16.mxu0 %v4261_v31 }
 0x30f   :  { %3748 = vmatprep.subr.bf16.mxu1 %v4230_v33 }
 0x311   :  { %2748 = vmatmul.mubr.bf16.gmra.mrb[36].mxu1 %v2383_v8  ;;  %3801 = vmatpush3.bf16.msra.mxu0 %v4261_v31 }
 0x312   :  { %3749 = vmatpush3.bf16.msra.mxu1 %v4231_v7  ;;  %2790 = vmatprep.mubr.bf16.mxu1 %v2382_v42 }
 0x313   :  { %3750 = vmatprep.subr.bf16.mxu1 %v4232_v2  ;;  %3802 = vmatprep.subr.bf16.mxu0 %v4265_v39 }
 0x315   :  { %3803 = vmatpush3.bf16.msra.mxu0 %v4265_v39 }
 0x316   :  { %3751 = vmatpush3.bf16.msra.mxu1 %v4233_v10  ;;  %3804 = vmatprep.subr.bf16.mxu0 %v4269_v45 }
 0x317   :  { %3752 = vmatprep.subr.bf16.mxu1 %v4234_v28 }
 0x319   :  { %3805 = vmatpush3.bf16.msra.mxu0 %v4269_v45 }
 0x31a   :  { %3753 = vmatpush3.bf16.msra.mxu1 %v4235_v27  ;;  %3806 = vmatprep.subr.bf16.mxu0 %v4273_v50 }
 0x31b   :  { %3754 = vmatprep.subr.bf16.mxu1 %v4236_v29 }
 0x31d   :  { %3807 = vmatpush3.bf16.msra.mxu0 %v4273_v50 }
 0x31e   :  { %3755 = vmatpush3.bf16.msra.mxu1 %v4237_v54 }
 0x31f   :  { %3756 = vmatprep.subr.bf16.mxu1 %v4238_v13 }
 0x322   :  { %3757 = vmatpush3.bf16.msra.mxu1 %v4239_v49 }
 0x323   :  { %3758 = vmatprep.subr.bf16.mxu1 %v4240_v1  ;;  %v3709_v1 = vld [vmem:[%s5130_s8] ss:$0 sm:$0xff] }
 0x326   :  { %3759 = vmatpush3.bf16.msra.mxu1 %v4241_v26 }
 0x327   :  { %3028 = vmatprep.subr.bf16.mxu1 %v4244_v34 }
 0x329   :  { %2791 = vmatmul.mubr.bf16.vlgmr.msra.gmra.mrb[40].mxu1 %v2381_v12 }
 0x32a   :  { %2798 = vmatprep.mubr.bf16.mxu1 %v2384_v53  ;;  %3029 = vmatpush1.bf16.msra.mxu1 %v4242_v15 }
 0x32b   :  { %3030 = vmatprep.subr.bf16.mxu1 %v4248_v14 }
 0x32e   :  { %3031 = vmatpush1.bf16.msra.mxu1 %v4246_v18 }
 0x32f   :  { %3032 = vmatprep.subr.bf16.mxu1 %v4252_v5 }
 0x331   :  { %2799 = vmatmul.mubr.bf16.gmra.mrb[44].mxu1 %v2383_v8 }
 0x332   :  { %3060 = vmatprep.mubr.bf16.mxu1 %v4386_v0  ;;  %3033 = vmatpush1.bf16.msra.mxu1 %v4250_v43 }
 0x333   :  { %3034 = vmatprep.subr.bf16.mxu1 %v4256_v38 }
 0x336   :  { %3035 = vmatpush1.bf16.msra.mxu1 %v4254_v36 }
 0x337   :  { %3036 = vmatprep.subr.bf16.mxu1 %v4260_v30 }
 0x33a   :  { %3037 = vmatpush1.bf16.msra.mxu1 %v4258_v41 }
 0x33b   :  { %3038 = vmatprep.subr.bf16.mxu1 %v4264_v6 }
 0x33e   :  { %3039 = vmatpush1.bf16.msra.mxu1 %v4262_v52 }
 0x33f   :  { %3040 = vmatprep.subr.bf16.mxu1 %v4268_v40 }
 0x342   :  { %3041 = vmatpush1.bf16.msra.mxu1 %v4266_v35 }
 0x343   :  { %3042 = vmatprep.subr.bf16.mxu1 %v4272_v16 }
 0x346   :  { %3043 = vmatpush1.bf16.msra.mxu1 %v4270_v22 }
 0x347   :  { %3812 = vmatprep.subr.bf16.mxu1 %v4991_v56 }
 0x3dc   :  { %v2739_v20 = vpop.f32.mrb[32].mxu1 }
 0x3dd   :  { %v2741_v46 = vpop.f32.mrb[33].mxu1  ;;  %v2807_v60 = vrot.slane %v2739_v20, 7 }
 0x3de   :  { %v2743_v9 = vpop.f32.mrb[34].mxu1 }
 0x3df   :  { %v2808_v47 = vrot.slane %v2743_v9, 7  ;;  %v2745_v48 = vpop.f32.mrb[35].mxu1 }
 0x3e1   :  { %v2813_v37 = vsel %vm571_vm1, %v2807_v60, %v2808_v47 }
 0x3e2   :  { %v2820_v12 = vadd.f32 %v2813_v37, %v2745_v48  ;;  %v4275_v37 = vld [vmem:[%s5127_s5 + $0x8] sm:$0xff]  }
 0x3e4   :  { %v2749_v57 = vpop.f32.mrb[36].mxu1 }
 0x3e5   :  { %v2809_v63 = vrot.slane %v2749_v57, 7  ;;  %v2751_v55 = vpop.f32.mrb[37].mxu1  ;;  %v4279_v57 = vld [vmem:[%s5127_s5 + $0x28] sm:$0xff]  }
 0x3e6   :  { %v2753_v42 = vpop.f32.mrb[38].mxu1 }
 0x3e7   :  { %v2812_v32 = vsel %vm571_vm1, %v2808_v47, %v2809_v63  ;;  %v2810_v61 = vrot.slane %v2753_v42, 7  ;;  %v2755_v62 = vpop.f32.mrb[39].mxu1 }
 0x3e8   :  { %v2817_v58 = vmul.f32 %v4599_v17, %v2812_v32 }
 0x3e9   :  { %v2814_v4 = vsel %vm571_vm1, %v2810_v61, %v2807_v60  ;;  %v2811_v3 = vsel %vm571_vm1, %v2809_v63, %v2810_v61  ;;  %v4280_v63 = vld [vmem:[%s5127_s5 + $0x30] sm:$0xff]  }
 0x3ea   :  { %v2821_v53 = vadd.f32 %v2817_v58, %v2751_v55  ;;  %v2815_v8 = vmul.f32 %v4567_v51, %v2814_v4  ;;  %v2822_v44 = vadd.f32 %v2811_v3, %v2755_v62  ;;  %v4281_v55 = vld [vmem:[%s5127_s5 + $0x38] sm:$0xff]  }
 0x3ec   :  { %v2819_v33 = vadd.f32 %v2815_v8, %v2741_v46 }
 0x3fc   :  { %v3760_v7 = vpop.f32.mrb[40].mxu1 }
 0x3fd   :  { %v3761_v2 = vpop.f32.mrb[41].mxu1 }
 0x3fe   :  { %v3762_v10 = vadd.f32 %v3761_v2, %v3760_v7  ;;  %v3763_v28 = vpop.f32.mrb[42].mxu1 }
 0x3ff   :  { %v3764_v27 = vpop.f32.mrb[43].mxu1 }
 0x400   :  { %v3765_v29 = vadd.f32 %v3764_v27, %v3763_v28  ;;  %v2823_v54 = vrot.slane %v3762_v10, 1 }
 0x402   :  { %v2824_v13 = vrot.slane %v3765_v29, 1 }
 0x404   :  { %v2829_v49 = vsel %vm636_vm9, %v2823_v54, %v2824_v13  ;;  %v3766_v26 = vpop.f32.mrb[44].mxu1 }
 0x405   :  { %v2835_v15 = vadd.f32 %v2829_v49, %v2819_v33  ;;  %v3767_v34 = vpop.f32.mrb[45].mxu1 }
 0x406   :  { %v3768_v59 = vadd.f32 %v3767_v34, %v3766_v26  ;;  %v3769_v14 = vpop.f32.mrb[46].mxu1 }
 0x407   :  { %v2846_v18 = vadd.f32 %v3709_v1, %v2835_v15  ;;  %v3770_v24 = vpop.f32.mrb[47].mxu1 }
 0x408   :  { %v2825_v43 = vrot.slane %v3768_v59, 1  ;;  %v3771_v5 = vadd.f32 %v3770_v24, %v3769_v14  ;;  %v3734_v59 = vld [vmem:[%s5131_s9] ss:$0 sm:$0xff] }
 0x409   :  { %vm2850_vm7 = vcmp.ge.f32.partialorder %v2846_v18, 0.0  ;;  %v2854_v25 = vmul.f32 0.1, %v2846_v18 }
 0x40a   :  { %v2828_v38 = vsel %vm636_vm9, %v2824_v13, %v2825_v43  ;;  %v2826_v36 = vrot.slane %v3771_v5, 1 }
 0x40b   :  { %v2832_v11 = vmul.f32 %v4677_v19, %v2828_v38  ;;  %v2858_v30 = vsel %vm2850_vm7, %v2846_v18, %v2854_v25 }
 0x40c   :  { %v2827_v41 = vsel %vm636_vm9, %v2825_v43, %v2826_v36  ;;  %v2830_v31 = vsel %vm636_vm9, %v2826_v36, %v2823_v54  ;;  %2862 = vst [vmem:[%s5135_s13] sm:$0xff] %v2858_v30 }
 0x40d   :  { %v2836_v6 = vadd.f32 %v2832_v11, %v2820_v12  ;;  %v2834_v52 = vmul.f32 %v4680_v21, %v2830_v31  ;;  %v2837_v39 = vadd.f32 %v2827_v41, %v2821_v53  ;;  %v4276_v12 = vld [vmem:[%s5127_s5 + $0x10] sm:$0xff]  }
 0x40f   :  { %v2847_v40 = vadd.f32 %v3709_v1, %v2836_v6  ;;  %v2838_v35 = vadd.f32 %v2834_v52, %v2822_v44  ;;  %v2848_v45 = vadd.f32 %v3709_v1, %v2837_v39 }
 0x411   :  { %vm2851_vm8 = vcmp.ge.f32.partialorder %v2847_v40, 0.0  ;;  %v2855_v16 = vmul.f32 0.1, %v2847_v40  ;;  %v2849_v22 = vadd.f32 %v3709_v1, %v2838_v35  ;;  %vm2852_vm10 = vcmp.ge.f32.partialorder %v2848_v45, 0.0 }
 0x412   :  { %v2856_v50 = vmul.f32 0.1, %v2848_v45 }
 0x413   :  { %vm2853_vm11 = vcmp.ge.f32.partialorder %v2849_v22, 0.0  ;;  %v2857_v20 = vmul.f32 0.1, %v2849_v22  ;;  %v2859_v46 = vsel %vm2851_vm8, %v2847_v40, %v2855_v16 }
 0x414   :  { %2863 = vst [vmem:[%s5135_s13 + $0x8] sm:$0xff] %v2859_v46  ;;  %v2866_v9 = vpack.c.bf16 %v2859_v46, %v2858_v30  ;;  %v2860_v60 = vsel %vm2852_vm10, %v2848_v45, %v2856_v50 }
 0x415   :  { %v2861_v47 = vsel %vm2853_vm11, %v2849_v22, %v2857_v20  ;;  %2864 = vst [vmem:[%s5135_s13 + $0x10] sm:$0xff] %v2860_v60 }
 0x416   :  { %3061 = vmatmul.mubr.bf16.vlgmr.msra.gmra.mrb[48].mxu1 %v2866_v9  ;;  %3808 = vmatprep.mubr.bf16.mxu0 %v2866_v9  ;;  %2865 = vst [vmem:[%s5135_s13 + $0x18] sm:$0xff] %v2861_v47  ;;  %v2867_v48 = vpack.c.bf16 %v2861_v47, %v2860_v60 }
 0x417   :  { %3070 = vmatprep.mubr.bf16.mxu1 %v4386_v0  ;;  %3813 = vmatpush3.bf16.msra.mxu1 %v4991_v56  ;;  %v4277_v0 = vld [vmem:[%s5127_s5 + $0x18] sm:$0xff]   ;;  %v4278_v56 = vld [vmem:[%s5127_s5 + $0x20] sm:$0xff]  }
 0x418   :  { %3809 = vmatmul.mubr.bf16.vlgmr.msra.gmra.mrb[40].mxu0 %v2867_v48  ;;  %3814 = vmatprep.subr.bf16.mxu1 %v4275_v37 }
 0x41b   :  { %3815 = vmatpush3.bf16.msra.mxu1 %v4275_v37 }
 0x41c   :  { %3816 = vmatprep.subr.bf16.mxu1 %v4276_v12 }
 0x41e   :  { %3071 = vmatmul.mubr.bf16.gmra.mrb[52].mxu1 %v2867_v48 }
 0x41f   :  { %3817 = vmatpush3.bf16.msra.mxu1 %v4276_v12 }
 0x420   :  { %3818 = vmatprep.subr.bf16.mxu1 %v4277_v0 }
 0x423   :  { %3819 = vmatpush3.bf16.msra.mxu1 %v4277_v0 }
 0x424   :  { %3820 = vmatprep.subr.bf16.mxu1 %v4278_v56 }
 0x427   :  { %3821 = vmatpush3.bf16.msra.mxu1 %v4278_v56 }
 0x428   :  { %3822 = vmatprep.subr.bf16.mxu1 %v4279_v57 }
 0x42b   :  { %3823 = vmatpush3.bf16.msra.mxu1 %v4279_v57 }
 0x42c   :  { %3824 = vmatprep.subr.bf16.mxu1 %v4280_v63 }
 0x42f   :  { %3825 = vmatpush3.bf16.msra.mxu1 %v4280_v63 }
 0x430   :  { %3826 = vmatprep.subr.bf16.mxu1 %v4281_v55 }
 0x433   :  { %3827 = vmatpush3.bf16.msra.mxu1 %v4281_v55 }
 0x4e9   :  { %v3062_v42 = vpop.f32.mrb[48].mxu1 }
 0x4ea   :  { %v3064_v32 = vpop.f32.mrb[49].mxu1  ;;  %v3130_v58 = vrot.slane %v3062_v42, 7 }
 0x4eb   :  { %v3066_v61 = vpop.f32.mrb[50].mxu1  ;;  %v3810_v62 = vpop.f32.mrb[40].mxu0 }
 0x4ec   :  { %v3131_v4 = vrot.slane %v3066_v61, 7  ;;  %v3068_v3 = vpop.f32.mrb[51].mxu1  ;;  %v3115_v53 = vpop.f32.mrb[41].mxu0  ;;  %v3148_v33 = vrot.slane %v3810_v62, 1 }
 0x4ed   :  { %v3146_v8 = vrot.slane %v3115_v53, 1  ;;  %v3811_v44 = vpop.f32.mrb[42].mxu0 }
 0x4ee   :  { %v3136_v7 = vsel %vm571_vm1, %v3130_v58, %v3131_v4  ;;  %v3149_v2 = vrot.slane %v3811_v44, 1  ;;  %v3118_v10 = vpop.f32.mrb[43].mxu0 }
 0x4ef   :  { %v3143_v28 = vadd.f32 %v3136_v7, %v3068_v3  ;;  %v3147_v27 = vrot.slane %v3118_v10, 1 }
 0x4f0   :  { %v3153_v29 = vsel %vm636_vm9, %v3149_v2, %v3146_v8  ;;  %v3150_v54 = vsel %vm636_vm9, %v3148_v33, %v3149_v2 }
 0x4f1   :  { %v3151_v13 = vsel %vm636_vm9, %v3147_v27, %v3148_v33  ;;  %v3152_v49 = vsel %vm636_vm9, %v3146_v8, %v3147_v27  ;;  %v3072_v1 = vpop.f32.mrb[52].mxu1  ;;  %v3157_v6 = vmul.f32 %v4680_v21, %v3153_v29 }
 0x4f2   :  { %v3155_v26 = vmul.f32 %v4677_v19, %v3151_v13  ;;  %v3132_v15 = vrot.slane %v3072_v1, 7  ;;  %v3074_v34 = vpop.f32.mrb[53].mxu1 }
 0x4f3   :  { %v3076_v14 = vpop.f32.mrb[54].mxu1 }
 0x4f4   :  { %v3159_v18 = vadd.f32 %v3155_v26, %v3143_v28  ;;  %v3135_v24 = vsel %vm571_vm1, %v3131_v4, %v3132_v15  ;;  %v3133_v43 = vrot.slane %v3076_v14, 7  ;;  %v3078_v5 = vpop.f32.mrb[55].mxu1 }
 0x4f5   :  { %v3140_v25 = vmul.f32 %v4599_v17, %v3135_v24 }
 0x4f6   :  { %v3137_v38 = vsel %vm571_vm1, %v3133_v43, %v3130_v58  ;;  %v3134_v36 = vsel %vm571_vm1, %v3132_v15, %v3133_v43  ;;  %v3170_v11 = vadd.f32 %v3734_v59, %v3159_v18  ;;  %v3743_v15 = vld [vmem:[%s5132_s10] ss:$0 sm:$0xff]  ;;  %s4391_s10 = smov 124  }
 0x4f7   :  { %v3144_v30 = vadd.f32 %v3140_v25, %v3074_v34  ;;  %v3138_v41 = vmul.f32 %v4567_v51, %v3137_v38  ;;  %v3145_v31 = vadd.f32 %v3134_v36, %v3078_v5 }
 0x4f8   :  { %vm3174_vm12 = vcmp.ge.f32.partialorder %v3170_v11, 0.0  ;;  %v3178_v52 = vmul.f32 0.1, %v3170_v11 }
 0x4f9   :  { %v3160_v39 = vadd.f32 %v3150_v54, %v3144_v30  ;;  %v3142_v40 = vadd.f32 %v3138_v41, %v3064_v32  ;;  %v3161_v35 = vadd.f32 %v3157_v6, %v3145_v31 }
 0x4fa   :  { %v3182_v45 = vsel %vm3174_vm12, %v3170_v11, %v3178_v52 }
 0x4fb   :  { %v3171_v16 = vadd.f32 %v3734_v59, %v3160_v39  ;;  %v3158_v22 = vadd.f32 %v3152_v49, %v3142_v40  ;;  %v3172_v50 = vadd.f32 %v3734_v59, %v3161_v35  ;;  %3186 = vst [vmem:[%s5136_s14 + $0x8] sm:$0xff] %v3182_v45 }
 0x4fd   :  { %vm3175_vm13 = vcmp.ge.f32.partialorder %v3171_v16, 0.0  ;;  %v3179_v20 = vmul.f32 0.1, %v3171_v16  ;;  %vm3176_vm14 = vcmp.ge.f32.partialorder %v3172_v50, 0.0  ;;  %v3180_v46 = vmul.f32 0.1, %v3172_v50 }
 0x4fe   :  { %v3169_v9 = vadd.f32 %v3734_v59, %v3158_v22 }
 0x4ff   :  { %v3183_v60 = vsel %vm3175_vm13, %v3171_v16, %v3179_v20  ;;  %v3184_v47 = vsel %vm3176_vm14, %v3172_v50, %v3180_v46 }
 0x500   :  { %3187 = vst [vmem:[%s5136_s14 + $0x10] sm:$0xff] %v3183_v60  ;;  %3188 = vst [vmem:[%s5136_s14 + $0x18] sm:$0xff] %v3184_v47  ;;  %v3190_v48 = vpack.c.bf16 %v3184_v47, %v3183_v60  ;;  %vm3173_vm15 = vcmp.ge.f32.partialorder %v3169_v9, 0.0  ;;  %v3177_v37 = vmul.f32 0.1, %v3169_v9 }
 0x502   :  { %v3181_v12 = vsel %vm3173_vm15, %v3169_v9, %v3177_v37 }
 0x503   :  { %3185 = vst [vmem:[%s5136_s14] sm:$0xff] %v3181_v12  ;;  %v3189_v0 = vpack.c.bf16 %v3182_v45, %v3181_v12  ;;  %s4390_s14 = smov 4  }
 0x505   :  { %3828 = vmatprep.mubr.bf16.mxu1 %v3189_v0 }
 0x506   :  { %3829 = vmatmul.mubr.bf16.vlgmr.msra.gmra.mrb[56].mxu1 %v3190_v48 }
 0x5d9   :  { %v3830_v56 = vpop.f32.mrb[56].mxu1 }
 0x5da   :  { %3344 = vrot.lane.b32.xlu1 %v3830_v56, %s4389_s25  ;;  %v3289_v57 = vpop.f32.mrb[57].mxu1  ;;  %v3306_v42 = vrot.slane %v3830_v56, 7 }
 0x5db   :  { %v3304_v63 = vrot.slane %v3289_v57, 7  ;;  %3340 = vrot.lane.b32.xlu0 %v3289_v57, %s4389_s25  ;;  %v3831_v55 = vpop.f32.mrb[58].mxu1 }
 0x5dc   :  { %v3307_v32 = vrot.slane %v3831_v55, 7  ;;  %v3292_v61 = vpop.f32.mrb[59].mxu1 }
 0x5dd   :  { %v3305_v62 = vrot.slane %v3292_v61, 7 }
 0x5de   :  { %3346 = vrot.lane.b32.xlu1 %v3831_v55, %s4389_s25  ;;  %v3308_v58 = vsel %vm571_vm1, %v3306_v42, %v3307_v32  ;;  %v3311_v4 = vsel %vm571_vm1, %v3307_v32, %v3304_v63 }
 0x5df   :  { %3342 = vrot.lane.b32.xlu0 %v3292_v61, %s4389_s25  ;;  %v3310_v3 = vsel %vm571_vm1, %v3304_v63, %v3305_v62  ;;  %v3309_v53 = vsel %vm571_vm1, %v3305_v62, %v3306_v42  ;;  %v3312_v8 = vmul.f32 %v4567_v51, %v3311_v4  ;;  %vm3413_vm1 = vcmask 31744  }
 0x5e0   :  { %v3314_v44 = vmul.f32 %v4599_v17, %v3309_v53 }
 0x5e2   :  { %3326 = vrot.lane.b32.xlu1 %v3308_v58, %s4390_s14 }
 0x5e3   :  { %3320 = vrot.lane.b32.xlu0 %v3312_v8, %s4390_s14 }
 0x5e6   :  { %3322 = vrot.lane.b32.xlu1 %v3310_v3, %s4390_s14 }
 0x5e7   :  { %3324 = vrot.lane.b32.xlu0 %v3314_v44, %s4390_s14 }
 0x64c   :  { %v3345_v33 = vpop.permute.xlu1 %3344 }
 0x64d   :  { %v3341_v7 = vpop.permute.xlu0 %3340  ;;  %v3354_v10 = vrot.slane %v3345_v33, 1 }
 0x64e   :  { %v3352_v13 = vrot.slane %v3341_v7, 1 }
 0x650   :  { %v3347_v2 = vpop.permute.xlu1 %3346 }
 0x651   :  { %v3355_v28 = vrot.slane %v3347_v2, 1  ;;  %v3343_v27 = vpop.permute.xlu0 %3342 }
 0x652   :  { %v3353_v29 = vrot.slane %v3343_v27, 1 }
 0x653   :  { %v3356_v54 = vsel %vm636_vm9, %v3354_v10, %v3355_v28  ;;  %v3359_v17 = vsel %vm636_vm9, %v3355_v28, %v3352_v13 }
 0x654   :  { %3372 = vrot.lane.b32.xlu0 %v3356_v54, %s4390_s14  ;;  %v3357_v51 = vsel %vm636_vm9, %v3353_v29, %v3354_v10  ;;  %v3358_v1 = vsel %vm636_vm9, %v3352_v13, %v3353_v29  ;;  %v3363_v26 = vmul.f32 %v4680_v21, %v3359_v17  ;;  %v3327_v59 = vpop.permute.xlu1 %3326 }
 0x655   :  { %v3361_v49 = vmul.f32 %v4677_v19, %v3357_v51  ;;  %v3321_v34 = vpop.permute.xlu0 %3320  ;;  %v3335_v23 = vadd.f32 %v3831_v55, %v3327_v59 }
 0x656   :  { %v3332_v5 = vadd.f32 %v3321_v34, %v3289_v57 }
 0x657   :  { %3370 = vrot.lane.b32.xlu1 %v3361_v49, %s4390_s14 }
 0x658   :  { %3368 = vrot.lane.b32.xlu0 %v3358_v1, %s4390_s14  ;;  %v3323_v19 = vpop.permute.xlu1 %3322 }
 0x659   :  { %v3325_v14 = vpop.permute.xlu0 %3324  ;;  %v3333_v25 = vadd.f32 %v3323_v19, %v3292_v61 }
 0x65a   :  { %v3334_v30 = vadd.f32 %v3830_v56, %v3325_v14 }
 0x65b   :  { %3374 = vrot.lane.b32.xlu1 %v3363_v26, %s4390_s14 }
 0x65c   :  { %3390 = vrot.lane.b32.xlu0 %v3743_v15, %s4390_s14 }
 0x6c6   :  { %v3373_v18 = vpop.permute.xlu0 %3372 }
 0x6c7   :  { %v3382_v52 = vadd.f32 %v3373_v18, %v3334_v30 }
 0x6c9   :  { %v3371_v24 = vpop.permute.xlu1 %3370 }
 0x6ca   :  { %v3369_v43 = vpop.permute.xlu0 %3368  ;;  %v3381_v38 = vadd.f32 %v3371_v24, %v3333_v25 }
 0x6cb   :  { %v3380_v36 = vadd.f32 %v3369_v43, %v3332_v5 }
 0x6cd   :  { %v3375_v11 = vpop.permute.xlu1 %3374 }
 0x6ce   :  { %v3391_v21 = vpop.permute.xlu0 %3390  ;;  %v3383_v41 = vadd.f32 %v3375_v11, %v3335_v23 }
 0x6cf   :  { %v3394_v31 = vadd.f32 %v3391_v21, %v3381_v38  ;;  %v3393_v6 = vadd.f32 %v3391_v21, %v3380_v36  ;;  %v3395_v40 = vadd.f32 %v3391_v21, %v3382_v52 }
 0x6d0   :  { %v3396_v39 = vadd.f32 %v3391_v21, %v3383_v41 }
 0x6d1   :  { %3403 = vrot.lane.b32.xlu0 %v3394_v31, %s4391_s10  ;;  %3401 = vrot.lane.b32.xlu1 %v3393_v6, %s4391_s10 }
 0x6d5   :  { %3407 = vrot.lane.b32.xlu0 %v3396_v39, %s4391_s10  ;;  %3405 = vrot.lane.b32.xlu1 %v3395_v40, %s4391_s10 }
 0x743   :  { %v3404_v35 = vpop.permute.xlu0 %3403  ;;  %v3402_v45 = vpop.permute.xlu1 %3401 }
 0x744   :  { %3415 = vst.msk [vmem:[%s5137_s15 + $0x8] sm:$0xff] %vm3413_vm1, %v3404_v35  ;;  %3414 = vst.msk [vmem:[%s5137_s15] sm:$0xff] %vm3413_vm1, %v3402_v45 }
 0x747   :  { %v3408_v16 = vpop.permute.xlu0 %3407  ;;  %v3406_v22 = vpop.permute.xlu1 %3405 }
 0x748   :  { %3417 = vst.msk [vmem:[%s5137_s15 + $0x18] sm:$0xff] %vm3413_vm1, %v3408_v16  ;;  %3416 = vst.msk [vmem:[%s5137_s15 + $0x10] sm:$0xff] %vm3413_vm1, %v3406_v22 }
 0x749   :  { %3438 = vsyncpa [#allocation3], 1 }
 0x74a   :  { %3439 = vsyncpa [#allocation5], 1 }
 0x74b   :  { %3440 = vsyncpa [#allocation8], 1 }

</bundles_post_ra>
